<compile_context>
chip_gen: v5e
topology: v5e:2x2
jax: 0.10.0
libtpu: 0.0.40
codegen_flags: <defaults>
</compile_context>

<pallas_src>
import functools
import math

import jax
import jax.numpy as jnp
from jax.experimental import pallas as pl
from jax.experimental.pallas import tpu as pltpu


CFG = dict(
    vocab_size=128,
    max_position=32,
    type_vocab=2,
    hidden=32,
    num_heads=2,
    num_layers=2,
    intermediate=64,
    num_labels=5,
    clf_hidden=64,
    batch=2,
    seq=8,
)

LANE_PAD = 128   # lane-dense width for the vector slab and the logit output


# ---------------------------------------------------------------------------
# Fused Pallas kernel: embeddings-LN -> N encoder layers -> classifier head
# ---------------------------------------------------------------------------

def _fused_bert_ner_kernel(
    emb_ref,      # [M, H]  f32   summed embeddings (pre-LN)
    mask_ref,     # [M, M]  f32   additive attention mask (block-diag + padding)
    vec_ref,      # [Nvec, 128] f32  packed biases / LN params (rows, see layout)
    wqkvo_ref,    # [4*L, H, H] bf16 stacked [wq, wk, wv, wo] per layer (wq pre-scaled)
    wi_ref,       # [L, H, I]   bf16
    wf_ref,       # [L, I, H]   bf16
    cw1_ref,      # [H, C]      bf16
    cw2_ref,      # [C, 128]    bf16 (lane-padded)
    o_ref,        # [M, 128]    f32  lane-dense logits
    *, num_layers, num_heads, hidden, inter, clf_hidden, eps):
    H, I, C = hidden, inter, clf_hidden
    Dh = H // num_heads

    def vec(idx, width):
        # static row / lane slice of the packed vector slab -> [1, width] f32
        return vec_ref[idx:idx + 1, 0:width]

    def layernorm(x, g, b):
        mu = jnp.mean(x, axis=-1, keepdims=True)
        xc = x - mu
        var = jnp.mean(xc * xc, axis=-1, keepdims=True)
        return xc * jax.lax.rsqrt(var + eps) * g + b

    def mm(x, w):   # bf16 MXU matmul, f32 accumulate (w is already bf16)
        return jnp.dot(x.astype(jnp.bfloat16), w,
                       preferred_element_type=jnp.float32)

    # Per-head column masks over the hidden dim: selecting a head's columns via
    # a broadcast multiply keeps every MXU operand full-width (no lane-unaligned
    # slices); zeroed columns drop out of the contraction.
    lane = jax.lax.broadcasted_iota(jnp.int32, (1, H), 1)
    head_masks = [((lane >= hh * Dh) & (lane < (hh + 1) * Dh)).astype(jnp.float32)
                  for hh in range(num_heads)]

    add_mask = mask_ref[...]                              # [M, M] additive

    # ---- embeddings -> LayerNorm (embedding gather done in the wrapper) ----
    h = layernorm(emb_ref[...], vec(0, H), vec(1, H))     # [M, H] f32

    QKT_DIMS = (((1,), (1,)), ((), ()))                   # q @ k^T, no k.T materialized

    for l in range(num_layers):          # static unroll (num_layers is small)
        vb = 2 + l * 10
        wq = wqkvo_ref[4 * l + 0]
        wk = wqkvo_ref[4 * l + 1]
        wv = wqkvo_ref[4 * l + 2]
        wo = wqkvo_ref[4 * l + 3]

        # ---------------- self-attention (block-diagonal over batch) --------
        q = mm(h, wq) + vec(vb + 0, H)   # softmax scale already folded into wq/bq
        k = mm(h, wk) + vec(vb + 1, H)
        v = mm(h, wv) + vec(vb + 2, H)

        k_bf = k.astype(jnp.bfloat16)
        ctx = jnp.zeros_like(q)
        for mh in head_masks:
            s = jax.lax.dot_general((q * mh).astype(jnp.bfloat16), k_bf,
                                    dimension_numbers=QKT_DIMS,
                                    preferred_element_type=jnp.float32)
            s = s + add_mask                               # [M, M]
            s = s - jnp.max(s, axis=-1, keepdims=True)
            p = jnp.exp(s)
            # Note: assumes >=1 unmasked key per row (same as reference model);
            # a fully-masked row would divide by ~0.
            p = p * pl.reciprocal(jnp.sum(p, axis=-1, keepdims=True),
                                  approx=True)
            ctx = ctx + mm(p, (v * mh).astype(jnp.bfloat16))

        attn_out = mm(ctx, wo) + vec(vb + 3, H)
        # hidden dropout is identity in eval; residual + LN fused here
        h = layernorm(h + attn_out, vec(vb + 4, H), vec(vb + 5, H))

        # ---------------- feed-forward ----------------
        inter_act = mm(h, wi_ref[l]) + vec(vb + 6, I)
        # TODO(synk): HF BERT's default "gelu" is the exact erf form; the tanh
        # approximation is used here for guaranteed Mosaic lowering (~1e-3 diff).
        inter_act = jax.nn.gelu(inter_act, approximate=True)
        ffn = mm(inter_act, wf_ref[l]) + vec(vb + 7, H)
        h = layernorm(h + ffn, vec(vb + 8, H), vec(vb + 9, H))

    # ---- classifier: Linear(H,64) -> ReLU -> Dropout(eval id) -> Linear(64,L)
    vb = 2 + num_layers * 10
    hid = jnp.maximum(mm(h, cw1_ref[...]) + vec(vb + 0, C), 0.0)
    logits = mm(hid, cw2_ref[...]) + vec(vb + 1, o_ref.shape[-1])   # [M, 128]
    o_ref[...] = logits.astype(o_ref.dtype)


# ---------------------------------------------------------------------------
# Parameters & wrapper
# ---------------------------------------------------------------------------

def init_params(key, cfg):
    H, I = cfg["hidden"], cfg["intermediate"]
    Ln = cfg["num_layers"]
    ks = jax.random.split(key, 12)
    nrm = lambda k, shape: jax.random.normal(k, shape, jnp.float32) * 0.02
    return {
        "word_emb": nrm(ks[0], (cfg["vocab_size"], H)),
        "pos_emb": nrm(ks[1], (cfg["max_position"], H)),
        "type_emb": nrm(ks[2], (cfg["type_vocab"], H)),
        "emb_ln_g": jnp.ones((H,), jnp.float32),
        "emb_ln_b": jnp.zeros((H,), jnp.float32),
        # per-layer weights stacked along a leading [num_layers] axis
        "wq": nrm(ks[3], (Ln, H, H)), "bq": jnp.zeros((Ln, H), jnp.float32),
        "wk": nrm(ks[4], (Ln, H, H)), "bk": jnp.zeros((Ln, H), jnp.float32),
        "wv": nrm(ks[5], (Ln, H, H)), "bv": jnp.zeros((Ln, H), jnp.float32),
        "wo": nrm(ks[6], (Ln, H, H)), "bo": jnp.zeros((Ln, H), jnp.float32),
        "ln1_g": jnp.ones((Ln, H), jnp.float32),
        "ln1_b": jnp.zeros((Ln, H), jnp.float32),
        "wi": nrm(ks[7], (Ln, H, I)), "bi": jnp.zeros((Ln, I), jnp.float32),
        "wf": nrm(ks[8], (Ln, I, H)), "bf": jnp.zeros((Ln, H), jnp.float32),
        "ln2_g": jnp.ones((Ln, H), jnp.float32),
        "ln2_b": jnp.zeros((Ln, H), jnp.float32),
        "clf_w1": nrm(ks[9], (H, cfg["clf_hidden"])),
        "clf_b1": jnp.zeros((cfg["clf_hidden"],), jnp.float32),
        "clf_w2": nrm(ks[10], (cfg["clf_hidden"], cfg["num_labels"])),
        "clf_b2": jnp.zeros((cfg["num_labels"],), jnp.float32),
    }


def _full_spec(a):
    """Whole-array VMEM block for an operand (grid=(1,))."""
    nd = a.ndim
    return pl.BlockSpec(a.shape, lambda i, _nd=nd: (0,) * _nd)


def bert_ner_forward(params, cfg, input_ids, token_type_ids, attention_mask):
    B, S = input_ids.shape
    H = cfg["hidden"]
    nH = cfg["num_heads"]
    L = cfg["num_labels"]
    C = cfg["clf_hidden"]
    Ln = cfg["num_layers"]
    I = cfg["intermediate"]
    M = B * S
    Dh = H // nH
    scale = 1.0 / math.sqrt(Dh)
    VW = LANE_PAD

    # ---- glue: embedding gathers stay in XLA (single gather ops) ----
    positions = jnp.arange(S, dtype=jnp.int32)
    emb = (jnp.take(params["word_emb"], input_ids, axis=0)
           + jnp.take(params["pos_emb"], positions, axis=0)[None, :, :]
           + jnp.take(params["type_emb"], token_type_ids, axis=0))     # [B, S, H]
    emb = emb.reshape(M, H)

    # Block-diagonal additive mask over all M rows: query i may attend key j
    # iff they belong to the same batch element AND key j is not padding.
    batch_ids = jnp.repeat(jnp.arange(B, dtype=jnp.int32), S)          # [M]
    key_ok = attention_mask.reshape(M) != 0                            # [M]
    allowed = (batch_ids[:, None] == batch_ids[None, :]) & key_ok[None, :]
    add_mask = jnp.where(allowed, 0.0, -1e9).astype(jnp.float32)       # [M, M]

    # fold the 1/sqrt(Dh) softmax scale into the query projection
    wq = params["wq"] * scale
    bq = params["bq"] * scale

    # ---- pack all 1-row vector params into one [Nvec, 128] f32 slab ----
    def pad_row(v):
        v = v.reshape(-1).astype(jnp.float32)
        return jnp.pad(v, (0, VW - v.shape[0]))

    rows = [pad_row(params["emb_ln_g"]), pad_row(params["emb_ln_b"])]
    for l in range(Ln):
        rows += [pad_row(bq[l]), pad_row(params["bk"][l]),
                 pad_row(params["bv"][l]), pad_row(params["bo"][l]),
                 pad_row(params["ln1_g"][l]), pad_row(params["ln1_b"][l]),
                 pad_row(params["bi"][l]), pad_row(params["bf"][l]),
                 pad_row(params["ln2_g"][l]), pad_row(params["ln2_b"][l])]
    rows += [pad_row(params["clf_b1"]), pad_row(params["clf_b2"])]
    vecs = jnp.stack(rows, axis=0)                    # [2 + 10*Ln + 2, 128] = [24, 128]

    # ---- stack / cast matmul weights to bf16 (MXU-native) ----
    wqkvo = jnp.stack([wq, params["wk"], params["wv"], params["wo"]], axis=1)
    wqkvo = wqkvo.reshape(Ln * 4, H, H).astype(jnp.bfloat16)           # [4*Ln, H, H]
    wi = params["wi"].astype(jnp.bfloat16)                             # [Ln, H, I]
    wf = params["wf"].astype(jnp.bfloat16)                             # [Ln, I, H]
    cw1 = params["clf_w1"].astype(jnp.bfloat16)                        # [H, C]
    cw2p = jnp.zeros((C, VW), jnp.float32).at[:, :L].set(
        params["clf_w2"]).astype(jnp.bfloat16)                         # [C, 128]

    operands = (emb, add_mask, vecs, wqkvo, wi, wf, cw1, cw2p)         # 8 operands

    kernel = functools.partial(
        _fused_bert_ner_kernel,
        num_layers=Ln, num_heads=nH, hidden=H, inter=I, clf_hidden=C, eps=1e-12)

    logits_pad = pl.pallas_call(
        kernel,
        out_shape=jax.ShapeDtypeStruct((M, VW), jnp.float32),
        grid=(1,),
        in_specs=[_full_spec(a) for a in operands],
        out_specs=pl.BlockSpec((M, VW), lambda i: (0, 0)),
    )(*operands)

    return logits_pad[:, :L].reshape(B, S, L)


# ---------------------------------------------------------------------------
# Main
# ---------------------------------------------------------------------------

if __name__ == "__main__":
    cfg = CFG
    key = jax.random.PRNGKey(0)
    pkey, ikey = jax.random.split(key)

    params = init_params(pkey, cfg)

    B, S = cfg["batch"], cfg["seq"]
    input_ids = jax.random.randint(ikey, (B, S), 0, cfg["vocab_size"], dtype=jnp.int32)
    token_type_ids = jnp.zeros((B, S), dtype=jnp.int32)
    attention_mask = jnp.ones((B, S), dtype=jnp.int32).at[:, -2:].set(0)  # exercise masking

    fwd = jax.jit(lambda a, b, c: bert_ner_forward(params, cfg, a, b, c))
    logits = fwd(input_ids, token_type_ids, attention_mask)
    logits = jax.block_until_ready(logits)

    assert logits.shape == (B, S, cfg["num_labels"]), logits.shape
    assert bool(jnp.all(jnp.isfinite(logits)))
    print("KERNEL_OK")
</pallas_src>

<mosaic_0001>
module attributes {stable_mosaic.version = 11 : i64} {
  func.func @_fused_bert_ner_kernel(%arg0: i32, %arg1: memref<16x32xf32, #tpu.memory_space<vmem>>, %arg2: memref<16x16xf32, #tpu.memory_space<vmem>>, %arg3: memref<24x128xf32, #tpu.memory_space<vmem>>, %arg4: memref<8x32x32xbf16, #tpu.memory_space<vmem>>, %arg5: memref<2x32x64xbf16, #tpu.memory_space<vmem>>, %arg6: memref<2x64x32xbf16, #tpu.memory_space<vmem>>, %arg7: memref<32x64xbf16, #tpu.memory_space<vmem>>, %arg8: memref<64x128xbf16, #tpu.memory_space<vmem>>, %arg9: memref<16x128xf32, #tpu.memory_space<vmem>>) attributes {dimension_semantics = [#tpu.dimension_semantics<arbitrary>], iteration_bounds = array<i64: 1>, scalar_prefetch = 0 : i64, scratch_operands = 0 : i64, tpu.core_type = #tpu.core_type<tc>, window_params = [{pipeline_mode = #tpu.pipeline_mode<synchronous>, transform_indices = @transform_0, window_bounds = array<i64: 16, 32>}, {pipeline_mode = #tpu.pipeline_mode<synchronous>, transform_indices = @transform_1, window_bounds = array<i64: 16, 16>}, {pipeline_mode = #tpu.pipeline_mode<synchronous>, transform_indices = @transform_2, window_bounds = array<i64: 24, 128>}, {pipeline_mode = #tpu.pipeline_mode<synchronous>, transform_indices = @transform_3, window_bounds = array<i64: 8, 32, 32>}, {pipeline_mode = #tpu.pipeline_mode<synchronous>, transform_indices = @transform_4, window_bounds = array<i64: 2, 32, 64>}, {pipeline_mode = #tpu.pipeline_mode<synchronous>, transform_indices = @transform_5, window_bounds = array<i64: 2, 64, 32>}, {pipeline_mode = #tpu.pipeline_mode<synchronous>, transform_indices = @transform_6, window_bounds = array<i64: 32, 64>}, {pipeline_mode = #tpu.pipeline_mode<synchronous>, transform_indices = @transform_7, window_bounds = array<i64: 64, 128>}, {pipeline_mode = #tpu.pipeline_mode<synchronous>, transform_indices = @transform_8, window_bounds = array<i64: 16, 128>}]} {
    %0 = tpu.iota {dimensions = array<i32: 1>} : vector<1x32xi32>
    %c0_i32 = arith.constant 0 : i32
    %1 = vector.broadcast %c0_i32 : i32 to vector<1x32xi32>
    %2 = arith.cmpi sge, %0, %1 : vector<1x32xi32>
    %c16_i32 = arith.constant 16 : i32
    %3 = vector.broadcast %c16_i32 : i32 to vector<1x32xi32>
    %4 = arith.cmpi slt, %0, %3 : vector<1x32xi32>
    %5 = arith.andi %2, %4 : vector<1x32xi1>
    %6 = arith.extui %5 : vector<1x32xi1> to vector<1x32xi32>
    %7 = arith.sitofp %6 : vector<1x32xi32> to vector<1x32xf32>
    %c16_i32_0 = arith.constant 16 : i32
    %8 = vector.broadcast %c16_i32_0 : i32 to vector<1x32xi32>
    %9 = arith.cmpi sge, %0, %8 : vector<1x32xi32>
    %c32_i32 = arith.constant 32 : i32
    %10 = vector.broadcast %c32_i32 : i32 to vector<1x32xi32>
    %11 = arith.cmpi slt, %0, %10 : vector<1x32xi32>
    %12 = arith.andi %9, %11 : vector<1x32xi1>
    %13 = arith.extui %12 : vector<1x32xi1> to vector<1x32xi32>
    %14 = arith.sitofp %13 : vector<1x32xi32> to vector<1x32xf32>
    %c0 = arith.constant 0 : index
    %c0_1 = arith.constant 0 : index
    %15 = vector.load %arg2[%c0, %c0_1] : memref<16x16xf32, #tpu.memory_space<vmem>>, vector<16x16xf32>
    %c0_2 = arith.constant 0 : index
    %c0_3 = arith.constant 0 : index
    %16 = vector.load %arg1[%c0_2, %c0_3] : memref<16x32xf32, #tpu.memory_space<vmem>>, vector<16x32xf32>
    %c0_4 = arith.constant 0 : index
    %c0_5 = arith.constant 0 : index
    %17 = vector.load %arg3[%c0_4, %c0_5] : memref<24x128xf32, #tpu.memory_space<vmem>>, vector<1x32xf32>
    %c1 = arith.constant 1 : index
    %c0_6 = arith.constant 0 : index
    %18 = vector.load %arg3[%c1, %c0_6] : memref<24x128xf32, #tpu.memory_space<vmem>>, vector<1x32xf32>
    %cst = arith.constant dense<0.000000e+00> : vector<16xf32>
    %19 = vector.multi_reduction <add>, %16, %cst [1] : vector<16x32xf32> to vector<16xf32>
    %20 = vector.shape_cast %19 : vector<16xf32> to vector<16x1xf32>
    %cst_7 = arith.constant 3.200000e+01 : f32
    %21 = vector.broadcast %cst_7 : f32 to vector<16x1xf32>
    %22 = arith.divf %20, %21 : vector<16x1xf32>
    %23 = vector.broadcast %22 : vector<16x1xf32> to vector<16x32xf32>
    %24 = arith.subf %16, %23 : vector<16x32xf32>
    %25 = arith.mulf %24, %24 : vector<16x32xf32>
    %cst_8 = arith.constant dense<0.000000e+00> : vector<16xf32>
    %26 = vector.multi_reduction <add>, %25, %cst_8 [1] : vector<16x32xf32> to vector<16xf32>
    %27 = vector.shape_cast %26 : vector<16xf32> to vector<16x1xf32>
    %cst_9 = arith.constant 3.200000e+01 : f32
    %28 = vector.broadcast %cst_9 : f32 to vector<16x1xf32>
    %29 = arith.divf %27, %28 : vector<16x1xf32>
    %cst_10 = arith.constant 9.99999996E-13 : f32
    %30 = vector.broadcast %cst_10 : f32 to vector<16x1xf32>
    %31 = arith.addf %29, %30 : vector<16x1xf32>
    %32 = math.rsqrt %31 : vector<16x1xf32>
    %33 = vector.broadcast %32 : vector<16x1xf32> to vector<16x32xf32>
    %34 = arith.mulf %24, %33 : vector<16x32xf32>
    %35 = vector.broadcast %17 : vector<1x32xf32> to vector<16x32xf32>
    %36 = arith.mulf %34, %35 : vector<16x32xf32>
    %37 = vector.broadcast %18 : vector<1x32xf32> to vector<16x32xf32>
    %38 = arith.addf %36, %37 : vector<16x32xf32>
    %c0_11 = arith.constant 0 : index
    %c0_12 = arith.constant 0 : index
    %c0_13 = arith.constant 0 : index
    %39 = vector.load %arg4[%c0_11, %c0_12, %c0_13] : memref<8x32x32xbf16, #tpu.memory_space<vmem>>, vector<1x32x32xbf16>
    %40 = vector.shape_cast %39 : vector<1x32x32xbf16> to vector<32x32xbf16>
    %c1_14 = arith.constant 1 : index
    %c0_15 = arith.constant 0 : index
    %c0_16 = arith.constant 0 : index
    %41 = vector.load %arg4[%c1_14, %c0_15, %c0_16] : memref<8x32x32xbf16, #tpu.memory_space<vmem>>, vector<1x32x32xbf16>
    %42 = vector.shape_cast %41 : vector<1x32x32xbf16> to vector<32x32xbf16>
    %c2 = arith.constant 2 : index
    %c0_17 = arith.constant 0 : index
    %c0_18 = arith.constant 0 : index
    %43 = vector.load %arg4[%c2, %c0_17, %c0_18] : memref<8x32x32xbf16, #tpu.memory_space<vmem>>, vector<1x32x32xbf16>
    %44 = vector.shape_cast %43 : vector<1x32x32xbf16> to vector<32x32xbf16>
    %c3 = arith.constant 3 : index
    %c0_19 = arith.constant 0 : index
    %c0_20 = arith.constant 0 : index
    %45 = vector.load %arg4[%c3, %c0_19, %c0_20] : memref<8x32x32xbf16, #tpu.memory_space<vmem>>, vector<1x32x32xbf16>
    %46 = vector.shape_cast %45 : vector<1x32x32xbf16> to vector<32x32xbf16>
    %47 = arith.truncf %38 : vector<16x32xf32> to vector<16x32xbf16>
    %cst_21 = arith.constant dense<0.000000e+00> : vector<16x32xf32>
    %48 = tpu.matmul %47, %40, %cst_21 {dimension_numbers = #tpu.dot_dimension_numbers<[1], [0], [0], [1], [0, 0, 1, 1], [], []>} : vector<16x32xbf16>, vector<32x32xbf16>, vector<16x32xf32> -> vector<16x32xf32>
    %c2_22 = arith.constant 2 : index
    %c0_23 = arith.constant 0 : index
    %49 = vector.load %arg3[%c2_22, %c0_23] : memref<24x128xf32, #tpu.memory_space<vmem>>, vector<1x32xf32>
    %50 = vector.broadcast %49 : vector<1x32xf32> to vector<16x32xf32>
    %51 = arith.addf %48, %50 : vector<16x32xf32>
    %52 = arith.truncf %38 : vector<16x32xf32> to vector<16x32xbf16>
    %cst_24 = arith.constant dense<0.000000e+00> : vector<16x32xf32>
    %53 = tpu.matmul %52, %42, %cst_24 {dimension_numbers = #tpu.dot_dimension_numbers<[1], [0], [0], [1], [0, 0, 1, 1], [], []>} : vector<16x32xbf16>, vector<32x32xbf16>, vector<16x32xf32> -> vector<16x32xf32>
    %c3_25 = arith.constant 3 : index
    %c0_26 = arith.constant 0 : index
    %54 = vector.load %arg3[%c3_25, %c0_26] : memref<24x128xf32, #tpu.memory_space<vmem>>, vector<1x32xf32>
    %55 = vector.broadcast %54 : vector<1x32xf32> to vector<16x32xf32>
    %56 = arith.addf %53, %55 : vector<16x32xf32>
    %57 = arith.truncf %38 : vector<16x32xf32> to vector<16x32xbf16>
    %cst_27 = arith.constant dense<0.000000e+00> : vector<16x32xf32>
    %58 = tpu.matmul %57, %44, %cst_27 {dimension_numbers = #tpu.dot_dimension_numbers<[1], [0], [0], [1], [0, 0, 1, 1], [], []>} : vector<16x32xbf16>, vector<32x32xbf16>, vector<16x32xf32> -> vector<16x32xf32>
    %c4 = arith.constant 4 : index
    %c0_28 = arith.constant 0 : index
    %59 = vector.load %arg3[%c4, %c0_28] : memref<24x128xf32, #tpu.memory_space<vmem>>, vector<1x32xf32>
    %60 = vector.broadcast %59 : vector<1x32xf32> to vector<16x32xf32>
    %61 = arith.addf %58, %60 : vector<16x32xf32>
    %62 = arith.truncf %56 : vector<16x32xf32> to vector<16x32xbf16>
    %cst_29 = arith.constant 0.000000e+00 : f32
    %63 = vector.broadcast %cst_29 : f32 to vector<16x32xf32>
    %64 = vector.broadcast %7 : vector<1x32xf32> to vector<16x32xf32>
    %65 = arith.mulf %51, %64 : vector<16x32xf32>
    %66 = arith.truncf %65 : vector<16x32xf32> to vector<16x32xbf16>
    %cst_30 = arith.constant dense<0.000000e+00> : vector<16x16xf32>
    %67 = tpu.matmul %66, %62, %cst_30 {dimension_numbers = #tpu.dot_dimension_numbers<[1], [1], [0], [0], [0, 0, 1, 0], [], []>} : vector<16x32xbf16>, vector<16x32xbf16>, vector<16x16xf32> -> vector<16x16xf32>
    %68 = arith.addf %67, %15 : vector<16x16xf32>
    %cst_31 = arith.constant dense<0xFF800000> : vector<16xf32>
    %69 = vector.multi_reduction <maximumf>, %68, %cst_31 [1] : vector<16x16xf32> to vector<16xf32>
    %70 = vector.shape_cast %69 : vector<16xf32> to vector<16x1xf32>
    %71 = vector.broadcast %70 : vector<16x1xf32> to vector<16x16xf32>
    %72 = arith.subf %68, %71 : vector<16x16xf32>
    %73 = math.exp %72 : vector<16x16xf32>
    %cst_32 = arith.constant dense<0.000000e+00> : vector<16xf32>
    %74 = vector.multi_reduction <add>, %73, %cst_32 [1] : vector<16x16xf32> to vector<16xf32>
    %75 = vector.shape_cast %74 : vector<16xf32> to vector<16x1xf32>
    %76 = tpu.reciprocal %75 {approx = true} : vector<16x1xf32> -> vector<16x1xf32>
    %77 = vector.broadcast %76 : vector<16x1xf32> to vector<16x16xf32>
    %78 = arith.mulf %73, %77 : vector<16x16xf32>
    %79 = vector.broadcast %7 : vector<1x32xf32> to vector<16x32xf32>
    %80 = arith.mulf %61, %79 : vector<16x32xf32>
    %81 = arith.truncf %80 : vector<16x32xf32> to vector<16x32xbf16>
    %82 = arith.truncf %78 : vector<16x16xf32> to vector<16x16xbf16>
    %cst_33 = arith.constant dense<0.000000e+00> : vector<16x32xf32>
    %83 = tpu.matmul %82, %81, %cst_33 {dimension_numbers = #tpu.dot_dimension_numbers<[1], [0], [0], [1], [0, 0, 1, 1], [], []>} : vector<16x16xbf16>, vector<16x32xbf16>, vector<16x32xf32> -> vector<16x32xf32>
    %84 = arith.addf %63, %83 : vector<16x32xf32>
    %85 = vector.broadcast %14 : vector<1x32xf32> to vector<16x32xf32>
    %86 = arith.mulf %51, %85 : vector<16x32xf32>
    %87 = arith.truncf %86 : vector<16x32xf32> to vector<16x32xbf16>
    %cst_34 = arith.constant dense<0.000000e+00> : vector<16x16xf32>
    %88 = tpu.matmul %87, %62, %cst_34 {dimension_numbers = #tpu.dot_dimension_numbers<[1], [1], [0], [0], [0, 0, 1, 0], [], []>} : vector<16x32xbf16>, vector<16x32xbf16>, vector<16x16xf32> -> vector<16x16xf32>
    %89 = arith.addf %88, %15 : vector<16x16xf32>
    %cst_35 = arith.constant dense<0xFF800000> : vector<16xf32>
    %90 = vector.multi_reduction <maximumf>, %89, %cst_35 [1] : vector<16x16xf32> to vector<16xf32>
    %91 = vector.shape_cast %90 : vector<16xf32> to vector<16x1xf32>
    %92 = vector.broadcast %91 : vector<16x1xf32> to vector<16x16xf32>
    %93 = arith.subf %89, %92 : vector<16x16xf32>
    %94 = math.exp %93 : vector<16x16xf32>
    %cst_36 = arith.constant dense<0.000000e+00> : vector<16xf32>
    %95 = vector.multi_reduction <add>, %94, %cst_36 [1] : vector<16x16xf32> to vector<16xf32>
    %96 = vector.shape_cast %95 : vector<16xf32> to vector<16x1xf32>
    %97 = tpu.reciprocal %96 {approx = true} : vector<16x1xf32> -> vector<16x1xf32>
    %98 = vector.broadcast %97 : vector<16x1xf32> to vector<16x16xf32>
    %99 = arith.mulf %94, %98 : vector<16x16xf32>
    %100 = vector.broadcast %14 : vector<1x32xf32> to vector<16x32xf32>
    %101 = arith.mulf %61, %100 : vector<16x32xf32>
    %102 = arith.truncf %101 : vector<16x32xf32> to vector<16x32xbf16>
    %103 = arith.truncf %99 : vector<16x16xf32> to vector<16x16xbf16>
    %cst_37 = arith.constant dense<0.000000e+00> : vector<16x32xf32>
    %104 = tpu.matmul %103, %102, %cst_37 {dimension_numbers = #tpu.dot_dimension_numbers<[1], [0], [0], [1], [0, 0, 1, 1], [], []>} : vector<16x16xbf16>, vector<16x32xbf16>, vector<16x32xf32> -> vector<16x32xf32>
    %105 = arith.addf %84, %104 : vector<16x32xf32>
    %106 = arith.truncf %105 : vector<16x32xf32> to vector<16x32xbf16>
    %cst_38 = arith.constant dense<0.000000e+00> : vector<16x32xf32>
    %107 = tpu.matmul %106, %46, %cst_38 {dimension_numbers = #tpu.dot_dimension_numbers<[1], [0], [0], [1], [0, 0, 1, 1], [], []>} : vector<16x32xbf16>, vector<32x32xbf16>, vector<16x32xf32> -> vector<16x32xf32>
    %c5 = arith.constant 5 : index
    %c0_39 = arith.constant 0 : index
    %108 = vector.load %arg3[%c5, %c0_39] : memref<24x128xf32, #tpu.memory_space<vmem>>, vector<1x32xf32>
    %109 = vector.broadcast %108 : vector<1x32xf32> to vector<16x32xf32>
    %110 = arith.addf %107, %109 : vector<16x32xf32>
    %111 = arith.addf %38, %110 : vector<16x32xf32>
    %c6 = arith.constant 6 : index
    %c0_40 = arith.constant 0 : index
    %112 = vector.load %arg3[%c6, %c0_40] : memref<24x128xf32, #tpu.memory_space<vmem>>, vector<1x32xf32>
    %c7 = arith.constant 7 : index
    %c0_41 = arith.constant 0 : index
    %113 = vector.load %arg3[%c7, %c0_41] : memref<24x128xf32, #tpu.memory_space<vmem>>, vector<1x32xf32>
    %cst_42 = arith.constant dense<0.000000e+00> : vector<16xf32>
    %114 = vector.multi_reduction <add>, %111, %cst_42 [1] : vector<16x32xf32> to vector<16xf32>
    %115 = vector.shape_cast %114 : vector<16xf32> to vector<16x1xf32>
    %cst_43 = arith.constant 3.200000e+01 : f32
    %116 = vector.broadcast %cst_43 : f32 to vector<16x1xf32>
    %117 = arith.divf %115, %116 : vector<16x1xf32>
    %118 = vector.broadcast %117 : vector<16x1xf32> to vector<16x32xf32>
    %119 = arith.subf %111, %118 : vector<16x32xf32>
    %120 = arith.mulf %119, %119 : vector<16x32xf32>
    %cst_44 = arith.constant dense<0.000000e+00> : vector<16xf32>
    %121 = vector.multi_reduction <add>, %120, %cst_44 [1] : vector<16x32xf32> to vector<16xf32>
    %122 = vector.shape_cast %121 : vector<16xf32> to vector<16x1xf32>
    %cst_45 = arith.constant 3.200000e+01 : f32
    %123 = vector.broadcast %cst_45 : f32 to vector<16x1xf32>
    %124 = arith.divf %122, %123 : vector<16x1xf32>
    %cst_46 = arith.constant 9.99999996E-13 : f32
    %125 = vector.broadcast %cst_46 : f32 to vector<16x1xf32>
    %126 = arith.addf %124, %125 : vector<16x1xf32>
    %127 = math.rsqrt %126 : vector<16x1xf32>
    %128 = vector.broadcast %127 : vector<16x1xf32> to vector<16x32xf32>
    %129 = arith.mulf %119, %128 : vector<16x32xf32>
    %130 = vector.broadcast %112 : vector<1x32xf32> to vector<16x32xf32>
    %131 = arith.mulf %129, %130 : vector<16x32xf32>
    %132 = vector.broadcast %113 : vector<1x32xf32> to vector<16x32xf32>
    %133 = arith.addf %131, %132 : vector<16x32xf32>
    %c0_47 = arith.constant 0 : index
    %c0_48 = arith.constant 0 : index
    %c0_49 = arith.constant 0 : index
    %134 = vector.load %arg5[%c0_47, %c0_48, %c0_49] : memref<2x32x64xbf16, #tpu.memory_space<vmem>>, vector<1x32x64xbf16>
    %135 = vector.shape_cast %134 : vector<1x32x64xbf16> to vector<32x64xbf16>
    %136 = arith.truncf %133 : vector<16x32xf32> to vector<16x32xbf16>
    %cst_50 = arith.constant dense<0.000000e+00> : vector<16x64xf32>
    %137 = tpu.matmul %136, %135, %cst_50 {dimension_numbers = #tpu.dot_dimension_numbers<[1], [0], [0], [1], [0, 0, 1, 1], [], []>} : vector<16x32xbf16>, vector<32x64xbf16>, vector<16x64xf32> -> vector<16x64xf32>
    %c8 = arith.constant 8 : index
    %c0_51 = arith.constant 0 : index
    %138 = vector.load %arg3[%c8, %c0_51] : memref<24x128xf32, #tpu.memory_space<vmem>>, vector<1x64xf32>
    %139 = vector.broadcast %138 : vector<1x64xf32> to vector<16x64xf32>
    %140 = arith.addf %137, %139 : vector<16x64xf32>
    %141 = arith.mulf %140, %140 : vector<16x64xf32>
    %142 = arith.mulf %140, %141 : vector<16x64xf32>
    %cst_52 = arith.constant 4.471500e-02 : f32
    %143 = vector.broadcast %cst_52 : f32 to vector<16x64xf32>
    %144 = arith.mulf %143, %142 : vector<16x64xf32>
    %145 = arith.addf %140, %144 : vector<16x64xf32>
    %cst_53 = arith.constant 0.797884583 : f32
    %146 = vector.broadcast %cst_53 : f32 to vector<16x64xf32>
    %147 = arith.mulf %146, %145 : vector<16x64xf32>
    %148 = math.tanh %147 : vector<16x64xf32>
    %cst_54 = arith.constant 1.000000e+00 : f32
    %149 = vector.broadcast %cst_54 : f32 to vector<16x64xf32>
    %150 = arith.addf %149, %148 : vector<16x64xf32>
    %cst_55 = arith.constant 5.000000e-01 : f32
    %151 = vector.broadcast %cst_55 : f32 to vector<16x64xf32>
    %152 = arith.mulf %151, %150 : vector<16x64xf32>
    %153 = arith.mulf %140, %152 : vector<16x64xf32>
    %c0_56 = arith.constant 0 : index
    %c0_57 = arith.constant 0 : index
    %c0_58 = arith.constant 0 : index
    %154 = vector.load %arg6[%c0_56, %c0_57, %c0_58] : memref<2x64x32xbf16, #tpu.memory_space<vmem>>, vector<1x64x32xbf16>
    %155 = vector.shape_cast %154 : vector<1x64x32xbf16> to vector<64x32xbf16>
    %156 = arith.truncf %153 : vector<16x64xf32> to vector<16x64xbf16>
    %cst_59 = arith.constant dense<0.000000e+00> : vector<16x32xf32>
    %157 = tpu.matmul %156, %155, %cst_59 {dimension_numbers = #tpu.dot_dimension_numbers<[1], [0], [0], [1], [0, 0, 1, 1], [], []>} : vector<16x64xbf16>, vector<64x32xbf16>, vector<16x32xf32> -> vector<16x32xf32>
    %c9 = arith.constant 9 : index
    %c0_60 = arith.constant 0 : index
    %158 = vector.load %arg3[%c9, %c0_60] : memref<24x128xf32, #tpu.memory_space<vmem>>, vector<1x32xf32>
    %159 = vector.broadcast %158 : vector<1x32xf32> to vector<16x32xf32>
    %160 = arith.addf %157, %159 : vector<16x32xf32>
    %161 = arith.addf %133, %160 : vector<16x32xf32>
    %c10 = arith.constant 10 : index
    %c0_61 = arith.constant 0 : index
    %162 = vector.load %arg3[%c10, %c0_61] : memref<24x128xf32, #tpu.memory_space<vmem>>, vector<1x32xf32>
    %c11 = arith.constant 11 : index
    %c0_62 = arith.constant 0 : index
    %163 = vector.load %arg3[%c11, %c0_62] : memref<24x128xf32, #tpu.memory_space<vmem>>, vector<1x32xf32>
    %cst_63 = arith.constant dense<0.000000e+00> : vector<16xf32>
    %164 = vector.multi_reduction <add>, %161, %cst_63 [1] : vector<16x32xf32> to vector<16xf32>
    %165 = vector.shape_cast %164 : vector<16xf32> to vector<16x1xf32>
    %cst_64 = arith.constant 3.200000e+01 : f32
    %166 = vector.broadcast %cst_64 : f32 to vector<16x1xf32>
    %167 = arith.divf %165, %166 : vector<16x1xf32>
    %168 = vector.broadcast %167 : vector<16x1xf32> to vector<16x32xf32>
    %169 = arith.subf %161, %168 : vector<16x32xf32>
    %170 = arith.mulf %169, %169 : vector<16x32xf32>
    %cst_65 = arith.constant dense<0.000000e+00> : vector<16xf32>
    %171 = vector.multi_reduction <add>, %170, %cst_65 [1] : vector<16x32xf32> to vector<16xf32>
    %172 = vector.shape_cast %171 : vector<16xf32> to vector<16x1xf32>
    %cst_66 = arith.constant 3.200000e+01 : f32
    %173 = vector.broadcast %cst_66 : f32 to vector<16x1xf32>
    %174 = arith.divf %172, %173 : vector<16x1xf32>
    %cst_67 = arith.constant 9.99999996E-13 : f32
    %175 = vector.broadcast %cst_67 : f32 to vector<16x1xf32>
    %176 = arith.addf %174, %175 : vector<16x1xf32>
    %177 = math.rsqrt %176 : vector<16x1xf32>
    %178 = vector.broadcast %177 : vector<16x1xf32> to vector<16x32xf32>
    %179 = arith.mulf %169, %178 : vector<16x32xf32>
    %180 = vector.broadcast %162 : vector<1x32xf32> to vector<16x32xf32>
    %181 = arith.mulf %179, %180 : vector<16x32xf32>
    %182 = vector.broadcast %163 : vector<1x32xf32> to vector<16x32xf32>
    %183 = arith.addf %181, %182 : vector<16x32xf32>
    %c4_68 = arith.constant 4 : index
    %c0_69 = arith.constant 0 : index
    %c0_70 = arith.constant 0 : index
    %184 = vector.load %arg4[%c4_68, %c0_69, %c0_70] : memref<8x32x32xbf16, #tpu.memory_space<vmem>>, vector<1x32x32xbf16>
    %185 = vector.shape_cast %184 : vector<1x32x32xbf16> to vector<32x32xbf16>
    %c5_71 = arith.constant 5 : index
    %c0_72 = arith.constant 0 : index
    %c0_73 = arith.constant 0 : index
    %186 = vector.load %arg4[%c5_71, %c0_72, %c0_73] : memref<8x32x32xbf16, #tpu.memory_space<vmem>>, vector<1x32x32xbf16>
    %187 = vector.shape_cast %186 : vector<1x32x32xbf16> to vector<32x32xbf16>
    %c6_74 = arith.constant 6 : index
    %c0_75 = arith.constant 0 : index
    %c0_76 = arith.constant 0 : index
    %188 = vector.load %arg4[%c6_74, %c0_75, %c0_76] : memref<8x32x32xbf16, #tpu.memory_space<vmem>>, vector<1x32x32xbf16>
    %189 = vector.shape_cast %188 : vector<1x32x32xbf16> to vector<32x32xbf16>
    %c7_77 = arith.constant 7 : index
    %c0_78 = arith.constant 0 : index
    %c0_79 = arith.constant 0 : index
    %190 = vector.load %arg4[%c7_77, %c0_78, %c0_79] : memref<8x32x32xbf16, #tpu.memory_space<vmem>>, vector<1x32x32xbf16>
    %191 = vector.shape_cast %190 : vector<1x32x32xbf16> to vector<32x32xbf16>
    %192 = arith.truncf %183 : vector<16x32xf32> to vector<16x32xbf16>
    %cst_80 = arith.constant dense<0.000000e+00> : vector<16x32xf32>
    %193 = tpu.matmul %192, %185, %cst_80 {dimension_numbers = #tpu.dot_dimension_numbers<[1], [0], [0], [1], [0, 0, 1, 1], [], []>} : vector<16x32xbf16>, vector<32x32xbf16>, vector<16x32xf32> -> vector<16x32xf32>
    %c12 = arith.constant 12 : index
    %c0_81 = arith.constant 0 : index
    %194 = vector.load %arg3[%c12, %c0_81] : memref<24x128xf32, #tpu.memory_space<vmem>>, vector<1x32xf32>
    %195 = vector.broadcast %194 : vector<1x32xf32> to vector<16x32xf32>
    %196 = arith.addf %193, %195 : vector<16x32xf32>
    %197 = arith.truncf %183 : vector<16x32xf32> to vector<16x32xbf16>
    %cst_82 = arith.constant dense<0.000000e+00> : vector<16x32xf32>
    %198 = tpu.matmul %197, %187, %cst_82 {dimension_numbers = #tpu.dot_dimension_numbers<[1], [0], [0], [1], [0, 0, 1, 1], [], []>} : vector<16x32xbf16>, vector<32x32xbf16>, vector<16x32xf32> -> vector<16x32xf32>
    %c13 = arith.constant 13 : index
    %c0_83 = arith.constant 0 : index
    %199 = vector.load %arg3[%c13, %c0_83] : memref<24x128xf32, #tpu.memory_space<vmem>>, vector<1x32xf32>
    %200 = vector.broadcast %199 : vector<1x32xf32> to vector<16x32xf32>
    %201 = arith.addf %198, %200 : vector<16x32xf32>
    %202 = arith.truncf %183 : vector<16x32xf32> to vector<16x32xbf16>
    %cst_84 = arith.constant dense<0.000000e+00> : vector<16x32xf32>
    %203 = tpu.matmul %202, %189, %cst_84 {dimension_numbers = #tpu.dot_dimension_numbers<[1], [0], [0], [1], [0, 0, 1, 1], [], []>} : vector<16x32xbf16>, vector<32x32xbf16>, vector<16x32xf32> -> vector<16x32xf32>
    %c14 = arith.constant 14 : index
    %c0_85 = arith.constant 0 : index
    %204 = vector.load %arg3[%c14, %c0_85] : memref<24x128xf32, #tpu.memory_space<vmem>>, vector<1x32xf32>
    %205 = vector.broadcast %204 : vector<1x32xf32> to vector<16x32xf32>
    %206 = arith.addf %203, %205 : vector<16x32xf32>
    %207 = arith.truncf %201 : vector<16x32xf32> to vector<16x32xbf16>
    %cst_86 = arith.constant 0.000000e+00 : f32
    %208 = vector.broadcast %cst_86 : f32 to vector<16x32xf32>
    %209 = vector.broadcast %7 : vector<1x32xf32> to vector<16x32xf32>
    %210 = arith.mulf %196, %209 : vector<16x32xf32>
    %211 = arith.truncf %210 : vector<16x32xf32> to vector<16x32xbf16>
    %cst_87 = arith.constant dense<0.000000e+00> : vector<16x16xf32>
    %212 = tpu.matmul %211, %207, %cst_87 {dimension_numbers = #tpu.dot_dimension_numbers<[1], [1], [0], [0], [0, 0, 1, 0], [], []>} : vector<16x32xbf16>, vector<16x32xbf16>, vector<16x16xf32> -> vector<16x16xf32>
    %213 = arith.addf %212, %15 : vector<16x16xf32>
    %cst_88 = arith.constant dense<0xFF800000> : vector<16xf32>
    %214 = vector.multi_reduction <maximumf>, %213, %cst_88 [1] : vector<16x16xf32> to vector<16xf32>
    %215 = vector.shape_cast %214 : vector<16xf32> to vector<16x1xf32>
    %216 = vector.broadcast %215 : vector<16x1xf32> to vector<16x16xf32>
    %217 = arith.subf %213, %216 : vector<16x16xf32>
    %218 = math.exp %217 : vector<16x16xf32>
    %cst_89 = arith.constant dense<0.000000e+00> : vector<16xf32>
    %219 = vector.multi_reduction <add>, %218, %cst_89 [1] : vector<16x16xf32> to vector<16xf32>
    %220 = vector.shape_cast %219 : vector<16xf32> to vector<16x1xf32>
    %221 = tpu.reciprocal %220 {approx = true} : vector<16x1xf32> -> vector<16x1xf32>
    %222 = vector.broadcast %221 : vector<16x1xf32> to vector<16x16xf32>
    %223 = arith.mulf %218, %222 : vector<16x16xf32>
    %224 = vector.broadcast %7 : vector<1x32xf32> to vector<16x32xf32>
    %225 = arith.mulf %206, %224 : vector<16x32xf32>
    %226 = arith.truncf %225 : vector<16x32xf32> to vector<16x32xbf16>
    %227 = arith.truncf %223 : vector<16x16xf32> to vector<16x16xbf16>
    %cst_90 = arith.constant dense<0.000000e+00> : vector<16x32xf32>
    %228 = tpu.matmul %227, %226, %cst_90 {dimension_numbers = #tpu.dot_dimension_numbers<[1], [0], [0], [1], [0, 0, 1, 1], [], []>} : vector<16x16xbf16>, vector<16x32xbf16>, vector<16x32xf32> -> vector<16x32xf32>
    %229 = arith.addf %208, %228 : vector<16x32xf32>
    %230 = vector.broadcast %14 : vector<1x32xf32> to vector<16x32xf32>
    %231 = arith.mulf %196, %230 : vector<16x32xf32>
    %232 = arith.truncf %231 : vector<16x32xf32> to vector<16x32xbf16>
    %cst_91 = arith.constant dense<0.000000e+00> : vector<16x16xf32>
    %233 = tpu.matmul %232, %207, %cst_91 {dimension_numbers = #tpu.dot_dimension_numbers<[1], [1], [0], [0], [0, 0, 1, 0], [], []>} : vector<16x32xbf16>, vector<16x32xbf16>, vector<16x16xf32> -> vector<16x16xf32>
    %234 = arith.addf %233, %15 : vector<16x16xf32>
    %cst_92 = arith.constant dense<0xFF800000> : vector<16xf32>
    %235 = vector.multi_reduction <maximumf>, %234, %cst_92 [1] : vector<16x16xf32> to vector<16xf32>
    %236 = vector.shape_cast %235 : vector<16xf32> to vector<16x1xf32>
    %237 = vector.broadcast %236 : vector<16x1xf32> to vector<16x16xf32>
    %238 = arith.subf %234, %237 : vector<16x16xf32>
    %239 = math.exp %238 : vector<16x16xf32>
    %cst_93 = arith.constant dense<0.000000e+00> : vector<16xf32>
    %240 = vector.multi_reduction <add>, %239, %cst_93 [1] : vector<16x16xf32> to vector<16xf32>
    %241 = vector.shape_cast %240 : vector<16xf32> to vector<16x1xf32>
    %242 = tpu.reciprocal %241 {approx = true} : vector<16x1xf32> -> vector<16x1xf32>
    %243 = vector.broadcast %242 : vector<16x1xf32> to vector<16x16xf32>
    %244 = arith.mulf %239, %243 : vector<16x16xf32>
    %245 = vector.broadcast %14 : vector<1x32xf32> to vector<16x32xf32>
    %246 = arith.mulf %206, %245 : vector<16x32xf32>
    %247 = arith.truncf %246 : vector<16x32xf32> to vector<16x32xbf16>
    %248 = arith.truncf %244 : vector<16x16xf32> to vector<16x16xbf16>
    %cst_94 = arith.constant dense<0.000000e+00> : vector<16x32xf32>
    %249 = tpu.matmul %248, %247, %cst_94 {dimension_numbers = #tpu.dot_dimension_numbers<[1], [0], [0], [1], [0, 0, 1, 1], [], []>} : vector<16x16xbf16>, vector<16x32xbf16>, vector<16x32xf32> -> vector<16x32xf32>
    %250 = arith.addf %229, %249 : vector<16x32xf32>
    %251 = arith.truncf %250 : vector<16x32xf32> to vector<16x32xbf16>
    %cst_95 = arith.constant dense<0.000000e+00> : vector<16x32xf32>
    %252 = tpu.matmul %251, %191, %cst_95 {dimension_numbers = #tpu.dot_dimension_numbers<[1], [0], [0], [1], [0, 0, 1, 1], [], []>} : vector<16x32xbf16>, vector<32x32xbf16>, vector<16x32xf32> -> vector<16x32xf32>
    %c15 = arith.constant 15 : index
    %c0_96 = arith.constant 0 : index
    %253 = vector.load %arg3[%c15, %c0_96] : memref<24x128xf32, #tpu.memory_space<vmem>>, vector<1x32xf32>
    %254 = vector.broadcast %253 : vector<1x32xf32> to vector<16x32xf32>
    %255 = arith.addf %252, %254 : vector<16x32xf32>
    %256 = arith.addf %183, %255 : vector<16x32xf32>
    %c16 = arith.constant 16 : index
    %c0_97 = arith.constant 0 : index
    %257 = vector.load %arg3[%c16, %c0_97] : memref<24x128xf32, #tpu.memory_space<vmem>>, vector<1x32xf32>
    %c17 = arith.constant 17 : index
    %c0_98 = arith.constant 0 : index
    %258 = vector.load %arg3[%c17, %c0_98] : memref<24x128xf32, #tpu.memory_space<vmem>>, vector<1x32xf32>
    %cst_99 = arith.constant dense<0.000000e+00> : vector<16xf32>
    %259 = vector.multi_reduction <add>, %256, %cst_99 [1] : vector<16x32xf32> to vector<16xf32>
    %260 = vector.shape_cast %259 : vector<16xf32> to vector<16x1xf32>
    %cst_100 = arith.constant 3.200000e+01 : f32
    %261 = vector.broadcast %cst_100 : f32 to vector<16x1xf32>
    %262 = arith.divf %260, %261 : vector<16x1xf32>
    %263 = vector.broadcast %262 : vector<16x1xf32> to vector<16x32xf32>
    %264 = arith.subf %256, %263 : vector<16x32xf32>
    %265 = arith.mulf %264, %264 : vector<16x32xf32>
    %cst_101 = arith.constant dense<0.000000e+00> : vector<16xf32>
    %266 = vector.multi_reduction <add>, %265, %cst_101 [1] : vector<16x32xf32> to vector<16xf32>
    %267 = vector.shape_cast %266 : vector<16xf32> to vector<16x1xf32>
    %cst_102 = arith.constant 3.200000e+01 : f32
    %268 = vector.broadcast %cst_102 : f32 to vector<16x1xf32>
    %269 = arith.divf %267, %268 : vector<16x1xf32>
    %cst_103 = arith.constant 9.99999996E-13 : f32
    %270 = vector.broadcast %cst_103 : f32 to vector<16x1xf32>
    %271 = arith.addf %269, %270 : vector<16x1xf32>
    %272 = math.rsqrt %271 : vector<16x1xf32>
    %273 = vector.broadcast %272 : vector<16x1xf32> to vector<16x32xf32>
    %274 = arith.mulf %264, %273 : vector<16x32xf32>
    %275 = vector.broadcast %257 : vector<1x32xf32> to vector<16x32xf32>
    %276 = arith.mulf %274, %275 : vector<16x32xf32>
    %277 = vector.broadcast %258 : vector<1x32xf32> to vector<16x32xf32>
    %278 = arith.addf %276, %277 : vector<16x32xf32>
    %c1_104 = arith.constant 1 : index
    %c0_105 = arith.constant 0 : index
    %c0_106 = arith.constant 0 : index
    %279 = vector.load %arg5[%c1_104, %c0_105, %c0_106] : memref<2x32x64xbf16, #tpu.memory_space<vmem>>, vector<1x32x64xbf16>
    %280 = vector.shape_cast %279 : vector<1x32x64xbf16> to vector<32x64xbf16>
    %281 = arith.truncf %278 : vector<16x32xf32> to vector<16x32xbf16>
    %cst_107 = arith.constant dense<0.000000e+00> : vector<16x64xf32>
    %282 = tpu.matmul %281, %280, %cst_107 {dimension_numbers = #tpu.dot_dimension_numbers<[1], [0], [0], [1], [0, 0, 1, 1], [], []>} : vector<16x32xbf16>, vector<32x64xbf16>, vector<16x64xf32> -> vector<16x64xf32>
    %c18 = arith.constant 18 : index
    %c0_108 = arith.constant 0 : index
    %283 = vector.load %arg3[%c18, %c0_108] : memref<24x128xf32, #tpu.memory_space<vmem>>, vector<1x64xf32>
    %284 = vector.broadcast %283 : vector<1x64xf32> to vector<16x64xf32>
    %285 = arith.addf %282, %284 : vector<16x64xf32>
    %286 = arith.mulf %285, %285 : vector<16x64xf32>
    %287 = arith.mulf %285, %286 : vector<16x64xf32>
    %cst_109 = arith.constant 4.471500e-02 : f32
    %288 = vector.broadcast %cst_109 : f32 to vector<16x64xf32>
    %289 = arith.mulf %288, %287 : vector<16x64xf32>
    %290 = arith.addf %285, %289 : vector<16x64xf32>
    %cst_110 = arith.constant 0.797884583 : f32
    %291 = vector.broadcast %cst_110 : f32 to vector<16x64xf32>
    %292 = arith.mulf %291, %290 : vector<16x64xf32>
    %293 = math.tanh %292 : vector<16x64xf32>
    %cst_111 = arith.constant 1.000000e+00 : f32
    %294 = vector.broadcast %cst_111 : f32 to vector<16x64xf32>
    %295 = arith.addf %294, %293 : vector<16x64xf32>
    %cst_112 = arith.constant 5.000000e-01 : f32
    %296 = vector.broadcast %cst_112 : f32 to vector<16x64xf32>
    %297 = arith.mulf %296, %295 : vector<16x64xf32>
    %298 = arith.mulf %285, %297 : vector<16x64xf32>
    %c1_113 = arith.constant 1 : index
    %c0_114 = arith.constant 0 : index
    %c0_115 = arith.constant 0 : index
    %299 = vector.load %arg6[%c1_113, %c0_114, %c0_115] : memref<2x64x32xbf16, #tpu.memory_space<vmem>>, vector<1x64x32xbf16>
    %300 = vector.shape_cast %299 : vector<1x64x32xbf16> to vector<64x32xbf16>
    %301 = arith.truncf %298 : vector<16x64xf32> to vector<16x64xbf16>
    %cst_116 = arith.constant dense<0.000000e+00> : vector<16x32xf32>
    %302 = tpu.matmul %301, %300, %cst_116 {dimension_numbers = #tpu.dot_dimension_numbers<[1], [0], [0], [1], [0, 0, 1, 1], [], []>} : vector<16x64xbf16>, vector<64x32xbf16>, vector<16x32xf32> -> vector<16x32xf32>
    %c19 = arith.constant 19 : index
    %c0_117 = arith.constant 0 : index
    %303 = vector.load %arg3[%c19, %c0_117] : memref<24x128xf32, #tpu.memory_space<vmem>>, vector<1x32xf32>
    %304 = vector.broadcast %303 : vector<1x32xf32> to vector<16x32xf32>
    %305 = arith.addf %302, %304 : vector<16x32xf32>
    %306 = arith.addf %278, %305 : vector<16x32xf32>
    %c20 = arith.constant 20 : index
    %c0_118 = arith.constant 0 : index
    %307 = vector.load %arg3[%c20, %c0_118] : memref<24x128xf32, #tpu.memory_space<vmem>>, vector<1x32xf32>
    %c21 = arith.constant 21 : index
    %c0_119 = arith.constant 0 : index
    %308 = vector.load %arg3[%c21, %c0_119] : memref<24x128xf32, #tpu.memory_space<vmem>>, vector<1x32xf32>
    %cst_120 = arith.constant dense<0.000000e+00> : vector<16xf32>
    %309 = vector.multi_reduction <add>, %306, %cst_120 [1] : vector<16x32xf32> to vector<16xf32>
    %310 = vector.shape_cast %309 : vector<16xf32> to vector<16x1xf32>
    %cst_121 = arith.constant 3.200000e+01 : f32
    %311 = vector.broadcast %cst_121 : f32 to vector<16x1xf32>
    %312 = arith.divf %310, %311 : vector<16x1xf32>
    %313 = vector.broadcast %312 : vector<16x1xf32> to vector<16x32xf32>
    %314 = arith.subf %306, %313 : vector<16x32xf32>
    %315 = arith.mulf %314, %314 : vector<16x32xf32>
    %cst_122 = arith.constant dense<0.000000e+00> : vector<16xf32>
    %316 = vector.multi_reduction <add>, %315, %cst_122 [1] : vector<16x32xf32> to vector<16xf32>
    %317 = vector.shape_cast %316 : vector<16xf32> to vector<16x1xf32>
    %cst_123 = arith.constant 3.200000e+01 : f32
    %318 = vector.broadcast %cst_123 : f32 to vector<16x1xf32>
    %319 = arith.divf %317, %318 : vector<16x1xf32>
    %cst_124 = arith.constant 9.99999996E-13 : f32
    %320 = vector.broadcast %cst_124 : f32 to vector<16x1xf32>
    %321 = arith.addf %319, %320 : vector<16x1xf32>
    %322 = math.rsqrt %321 : vector<16x1xf32>
    %323 = vector.broadcast %322 : vector<16x1xf32> to vector<16x32xf32>
    %324 = arith.mulf %314, %323 : vector<16x32xf32>
    %325 = vector.broadcast %307 : vector<1x32xf32> to vector<16x32xf32>
    %326 = arith.mulf %324, %325 : vector<16x32xf32>
    %327 = vector.broadcast %308 : vector<1x32xf32> to vector<16x32xf32>
    %328 = arith.addf %326, %327 : vector<16x32xf32>
    %c0_125 = arith.constant 0 : index
    %c0_126 = arith.constant 0 : index
    %329 = vector.load %arg7[%c0_125, %c0_126] : memref<32x64xbf16, #tpu.memory_space<vmem>>, vector<32x64xbf16>
    %330 = arith.truncf %328 : vector<16x32xf32> to vector<16x32xbf16>
    %cst_127 = arith.constant dense<0.000000e+00> : vector<16x64xf32>
    %331 = tpu.matmul %330, %329, %cst_127 {dimension_numbers = #tpu.dot_dimension_numbers<[1], [0], [0], [1], [0, 0, 1, 1], [], []>} : vector<16x32xbf16>, vector<32x64xbf16>, vector<16x64xf32> -> vector<16x64xf32>
    %c22 = arith.constant 22 : index
    %c0_128 = arith.constant 0 : index
    %332 = vector.load %arg3[%c22, %c0_128] : memref<24x128xf32, #tpu.memory_space<vmem>>, vector<1x64xf32>
    %333 = vector.broadcast %332 : vector<1x64xf32> to vector<16x64xf32>
    %334 = arith.addf %331, %333 : vector<16x64xf32>
    %cst_129 = arith.constant 0.000000e+00 : f32
    %335 = vector.broadcast %cst_129 : f32 to vector<16x64xf32>
    %336 = arith.maximumf %334, %335 : vector<16x64xf32>
    %c0_130 = arith.constant 0 : index
    %c0_131 = arith.constant 0 : index
    %337 = vector.load %arg8[%c0_130, %c0_131] : memref<64x128xbf16, #tpu.memory_space<vmem>>, vector<64x128xbf16>
    %338 = arith.truncf %336 : vector<16x64xf32> to vector<16x64xbf16>
    %cst_132 = arith.constant dense<0.000000e+00> : vector<16x128xf32>
    %339 = tpu.matmul %338, %337, %cst_132 {dimension_numbers = #tpu.dot_dimension_numbers<[1], [0], [0], [1], [0, 0, 1, 1], [], []>} : vector<16x64xbf16>, vector<64x128xbf16>, vector<16x128xf32> -> vector<16x128xf32>
    %c23 = arith.constant 23 : index
    %c0_133 = arith.constant 0 : index
    %340 = vector.load %arg3[%c23, %c0_133] : memref<24x128xf32, #tpu.memory_space<vmem>>, vector<1x128xf32>
    %341 = vector.broadcast %340 : vector<1x128xf32> to vector<16x128xf32>
    %342 = arith.addf %339, %341 : vector<16x128xf32>
    %c0_134 = arith.constant 0 : index
    %c0_135 = arith.constant 0 : index
    %343 = vector.load %arg9[%c0_134, %c0_135] : memref<16x128xf32, #tpu.memory_space<vmem>>, vector<16x128xf32>
    tpu.vector_store %arg9[%c0_134, %c0_135], %342 {strides = array<i32>} : memref<16x128xf32, #tpu.memory_space<vmem>>, vector<16x128xf32>,
    return
  }
  func.func @transform_0(%arg0: i32) -> (i32, i32) {
    %c0_i32 = arith.constant 0 : i32
    %c0_i32_0 = arith.constant 0 : i32
    %c0_i32_1 = arith.constant 0 : i32
    return %c0_i32, %c0_i32_0 : i32, i32
  }
  func.func @transform_1(%arg0: i32) -> (i32, i32) {
    %c0_i32 = arith.constant 0 : i32
    %c0_i32_0 = arith.constant 0 : i32
    %c0_i32_1 = arith.constant 0 : i32
    return %c0_i32, %c0_i32_0 : i32, i32
  }
  func.func @transform_2(%arg0: i32) -> (i32, i32) {
    %c0_i32 = arith.constant 0 : i32
    %c0_i32_0 = arith.constant 0 : i32
    %c0_i32_1 = arith.constant 0 : i32
    return %c0_i32, %c0_i32_0 : i32, i32
  }
  func.func @transform_3(%arg0: i32) -> (i32, i32, i32) {
    %c0_i32 = arith.constant 0 : i32
    %c0_i32_0 = arith.constant 0 : i32
    %c0_i32_1 = arith.constant 0 : i32
    %c0_i32_2 = arith.constant 0 : i32
    return %c0_i32, %c0_i32_0, %c0_i32_1 : i32, i32, i32
  }
  func.func @transform_4(%arg0: i32) -> (i32, i32, i32) {
    %c0_i32 = arith.constant 0 : i32
    %c0_i32_0 = arith.constant 0 : i32
    %c0_i32_1 = arith.constant 0 : i32
    %c0_i32_2 = arith.constant 0 : i32
    return %c0_i32, %c0_i32_0, %c0_i32_1 : i32, i32, i32
  }
  func.func @transform_5(%arg0: i32) -> (i32, i32, i32) {
    %c0_i32 = arith.constant 0 : i32
    %c0_i32_0 = arith.constant 0 : i32
    %c0_i32_1 = arith.constant 0 : i32
    %c0_i32_2 = arith.constant 0 : i32
    return %c0_i32, %c0_i32_0, %c0_i32_1 : i32, i32, i32
  }
  func.func @transform_6(%arg0: i32) -> (i32, i32) {
    %c0_i32 = arith.constant 0 : i32
    %c0_i32_0 = arith.constant 0 : i32
    %c0_i32_1 = arith.constant 0 : i32
    return %c0_i32, %c0_i32_0 : i32, i32
  }
  func.func @transform_7(%arg0: i32) -> (i32, i32) {
    %c0_i32 = arith.constant 0 : i32
    %c0_i32_0 = arith.constant 0 : i32
    %c0_i32_1 = arith.constant 0 : i32
    return %c0_i32, %c0_i32_0 : i32, i32
  }
  func.func @transform_8(%arg0: i32) -> (i32, i32) {
    %c0_i32 = arith.constant 0 : i32
    %c0_i32_0 = arith.constant 0 : i32
    %c0_i32_1 = arith.constant 0 : i32
    return %c0_i32, %c0_i32_0 : i32, i32
  }
}

</mosaic_0001>

<bundles_post_ra>
// kernel: _lambda_.1
= control target key start
LH: loop header
LB: loop body
LE: loop exit
PB: predicated region body
PF: predicated region fallthrough
CT: control target
= control target key end

     0   :  { %vm48_vm0 = vcmask 261120   ;;  %v1495_v4 = vmov 32.0   ;;  %v30_v56 = vlaneseq  ;;  %vm237_vm12 = vcmask 130048   ;;  %s1864_s0 = inlined_call_operand.vmem [shape: f32[16,32], index: 0, kind: input, shape index: {}]   ;;  %s1865_s2 = inlined_call_operand.vmem [shape: f32[24,128], index: 2, kind: input, shape index: {}]   ;;  %s1866_s3 = inlined_call_operand.vmem [shape: bf16[8,32,32], index: 3, kind: input, shape index: {}]   ;;  %s1867_s1 = inlined_call_operand.vmem [shape: f32[16,16], index: 1, kind: input, shape index: {}]   ;;  %s1868_s4 = inlined_call_operand.vmem [shape: bf16[2,32,64], index: 4, kind: input, shape index: {}]   ;;  %s1869_s5 = inlined_call_operand.vmem [shape: bf16[2,64,32], index: 5, kind: input, shape index: {}]   ;;  %s1870_s6 = inlined_call_operand.vmem [shape: bf16[32,64], index: 6, kind: input, shape index: {}]   ;;  %s1871_s7 = inlined_call_operand.vmem [shape: bf16[64,128], index: 7, kind: input, shape index: {}]   ;;  %s1872_s8 = inlined_call_operand.vmem [shape: f32[16,128], index: 8, kind: output, shape index: {}]  }
   0x1   :  { %v44_v0 = vld [vmem:[%s1864_s0] sm:$0xff]  ;;  %v45_v2 = vld [vmem:[%s1864_s0 + $0x8] sm:$0xff]  ;;  %1433 = vrcp.f32 %v1495_v4  ;;  %v1376_v22 = vld [vmem:[%s1866_s3 + $0x18] sm:$0xff] }
   0x2   :  { %v49_v1 = vsel %vm48_vm0, %v44_v0, 0.0  ;;  %v52_v3 = vsel %vm48_vm0, %v45_v2, 0.0  ;;  %v1374_v21 = vld [vmem:[%s1866_s3 + $0x8] sm:$0xff]  ;;  %177 = vmatpush.bf16.msra.mxu1 %v1376_v22  ;;  %v1373_v25 = vld [vmem:[%s1866_s3] sm:$0xff]  ;;  %v1375_v26 = vld [vmem:[%s1866_s3 + $0x10] sm:$0xff]  ;;  %v31_v59 = vand.u32 127, %v30_v56 }
   0x3   :  { %50 = vadd.xlane.f32.xlu0 %v49_v1  ;;  %v1378_v23 = vld [vmem:[%s1866_s3 + $0x28] sm:$0xff]  ;;  %149 = vmatpush.bf16.msra.mxu0 %v1374_v21  ;;  %v1377_v28 = vld [vmem:[%s1866_s3 + $0x20] sm:$0xff] }
   0x4   :  { %205 = vmatpush.bf16.msra.mxu2 %v1378_v23  ;;  %v1409_v46 = vld [vmem:[%s1865_s2] ss:$0 sm:$0xff]  ;;  %v1410_v51 = vld [vmem:[%s1865_s2 + $0x1] ss:$0 sm:$0xff]  ;;  %v1412_v60 = vld [vmem:[%s1865_s2 + $0x3] ss:$0 sm:$0xff] }
   0x5   :  { %vm37_vm8 = vcmp.ge.s32.totalorder %v31_v59, 16  ;;  %vm38_vm9 = vcmp.lt.s32.totalorder %v31_v59, 32  ;;  %vm33_vm10 = vcmp.lt.s32.totalorder %v31_v59, 16 }
   0x6   :  { %178 = vmatpush.bf16.msra.mxu1 %v1375_v26  ;;  %vm39_vm11 = vmand %vm37_vm8, %vm38_vm9 }
   0x7   :  { %v1434_v5 = vpop.eup %1433  ;;  %150 = vmatpush.bf16.msra.mxu0 %v1373_v25 }
   0x8   :  { %v56_v6 = vmul.f32 32.0, %v1434_v5  ;;  %vm60_vm1 = vweird.f32 %v1434_v5  ;;  %206 = vmatpush.bf16.msra.mxu2 %v1377_v28 }
   0xa   :  { %v57_v7 = vsub.f32 1.0, %v56_v6 }
   0xb   :  { %53 = vadd.xlane.f32.xlu0 %v52_v3  ;;  %v1413_v3 = vld [vmem:[%s1865_s2 + $0x4] ss:$0 sm:$0xff] }
   0xc   :  { %v58_v8 = vmul.f32 %v1434_v5, %v57_v7 }
   0xe   :  { %v59_v9 = vadd.f32 %v1434_v5, %v58_v8  ;;  %v1496_v8 = vmov 0.0  }
  0x10   :  { %v1550_v10 = vsel %vm60_vm1, %v1434_v5, %v59_v9  ;;  %v1601_v9 = vsel %vm33_vm10, 1.0, %v1496_v8 }
  0x76   :  { %v51_v11 = vpop.xlane.xlu0 %50 }
  0x77   :  { %v62_v12 = vmul.f32 %v1550_v10, %v51_v11  ;;  %v1603_v11 = vsel %vm39_vm11, 1.0, %v1496_v8 }
  0x79   :  { %v64_v13 = vsub.f32 %v44_v0, %v62_v12  ;;  %v1411_v0 = vld [vmem:[%s1865_s2 + $0x2] ss:$0 sm:$0xff] }
  0x7b   :  { %v66_v14 = vmul.f32 %v64_v13, %v64_v13 }
  0x7d   :  { %v68_v15 = vsel %vm48_vm0, %v66_v14, 0.0 }
  0x7e   :  { %69 = vadd.xlane.f32.xlu1 %v68_v15  ;;  %v54_v16 = vpop.xlane.xlu0 %53 }
  0x7f   :  { %v63_v17 = vmul.f32 %v1550_v10, %v54_v16 }
  0x81   :  { %v65_v18 = vsub.f32 %v45_v2, %v63_v17 }
  0x83   :  { %v67_v19 = vmul.f32 %v65_v18, %v65_v18 }
  0x85   :  { %v71_v20 = vsel %vm48_vm0, %v67_v19, 0.0 }
  0x86   :  { %72 = vadd.xlane.f32.xlu1 %v71_v20 }
  0xf1   :  { %v70_v24 = vpop.xlane.xlu1 %69 }
  0xf2   :  { %v74_v27 = vmul.f32 %v70_v24, %v1550_v10 }
  0xf4   :  { %v76_v29 = vadd.f32 1e-12, %v74_v27  ;;  %v1618_v27 = vld [vmem:[%s1867_s1] sm:$0xff] }
  0xf6   :  { %1435 = vrsqrt.f32 %v76_v29  ;;  %vm84_vm3 = vweird.f32 %v76_v29 }
  0xf9   :  { %v73_v30 = vpop.xlane.xlu1 %72 }
  0xfa   :  { %v75_v31 = vmul.f32 %v73_v30, %v1550_v10 }
  0xfc   :  { %v1436_v32 = vpop.eup %1435  ;;  %v77_v33 = vadd.f32 1e-12, %v75_v31 }
  0xfd   :  { %v79_v34 = vmul.f32 %v1436_v32, %v76_v29  ;;  %vm85_vm2 = vweird.f32 %v1436_v32 }
  0xfe   :  { %1437 = vrsqrt.f32 %v77_v33  ;;  %vm86_vm4 = vmor %vm84_vm3, %vm85_vm2  ;;  %vm94_vm6 = vweird.f32 %v77_v33 }
  0xff   :  { %v80_v35 = vmul.f32 %v1436_v32, %v79_v34 }
 0x101   :  { %v81_v36 = vmul.f32 0.5, %v80_v35 }
 0x103   :  { %v82_v37 = vsub.f32 1.5, %v81_v36 }
 0x104   :  { %v1438_v38 = vpop.eup %1437 }
 0x105   :  { %v83_v39 = vmul.f32 %v1436_v32, %v82_v37  ;;  %v89_v40 = vmul.f32 %v1438_v38, %v77_v33  ;;  %vm95_vm5 = vweird.f32 %v1438_v38 }
 0x106   :  { %vm96_vm7 = vmor %vm94_vm6, %vm95_vm5 }
 0x107   :  { %v90_v41 = vmul.f32 %v1438_v38, %v89_v40  ;;  %v87_v42 = vsel %vm86_vm4, %v1436_v32, %v83_v39  ;;  %v1625_v32 = vld [vmem:[%s1867_s1 + $0x8] sm:$0xff]  ;;  %vm519_vm4 = vcmask 523264  }
 0x108   :  { %v98_v45 = vmul.f32 %v87_v42, %v64_v13 }
 0x109   :  { %v91_v43 = vmul.f32 0.5, %v90_v41 }
 0x10a   :  { %v101_v50 = vmul.f32 %v1409_v46, %v98_v45 }
 0x10b   :  { %v92_v44 = vsub.f32 1.5, %v91_v43 }
 0x10c   :  { %v1582_v53 = vadd.f32 %v1410_v51, %v101_v50 }
 0x10d   :  { %v93_v47 = vmul.f32 %v1438_v38, %v92_v44 }
 0x10f   :  { %v97_v48 = vsel %vm96_vm7, %v1438_v38, %v93_v47 }
 0x110   :  { %v99_v49 = vmul.f32 %v97_v48, %v65_v18 }
 0x112   :  { %v102_v52 = vmul.f32 %v1409_v46, %v99_v49 }
 0x114   :  { %v1584_v54 = vadd.f32 %v1410_v51, %v102_v52 }
 0x116   :  { %v125_v55 = vpack.c.bf16 %v1584_v54, %v1582_v53 }
 0x118   :  { %1195 = vmatmul.msk.bf16.vlgmr.msra.gmra.mxu0 %vm48_vm0, %v125_v55  ;;  %1204 = vmatmul.msk.bf16.vlgmr.msra.gmra.mxu1 %vm48_vm0, %v125_v55 }
 0x119   :  { %1213 = vmatmul.msk.bf16.vlgmr.msra.gmra.mxu2 %vm48_vm0, %v125_v55 }
 0x195   :  { %v152_v57 = vpop.f32.mrf.mxu0  ;;  %v180_v58 = vpop.f32.mrf.mxu1 }
 0x196   :  { %v181_v1 = vadd.f32 %v1412_v60, %v180_v58  ;;  %v153_v6 = vadd.f32 %v1411_v0, %v152_v57 }
 0x198   :  { %v214_v17 = vmul.f32 %v1601_v9, %v153_v6  ;;  %v264_v18 = vmul.f32 %v1603_v11, %v153_v6 }
 0x19c   :  { %v208_v61 = vpop.f32.mrf.mxu2 }
 0x19d   :  { %v154_v62 = vpop.f32.mrf.mxu0  ;;  %v182_v63 = vpop.f32.mrf.mxu1  ;;  %v209_v12 = vadd.f32 %v1413_v3, %v208_v61 }
 0x19e   :  { %v183_v2 = vadd.f32 %v1412_v60, %v182_v63  ;;  %v155_v4 = vadd.f32 %v1411_v0, %v154_v62 }
 0x19f   :  { %v260_v19 = vmul.f32 %v1601_v9, %v209_v12  ;;  %v306_v20 = vmul.f32 %v1603_v11, %v209_v12 }
 0x1a0   :  { %v213_v5 = vpack.c.bf16 %v183_v2, %v181_v1  ;;  %v215_v13 = vmul.f32 %v1601_v9, %v155_v4  ;;  %v265_v14 = vmul.f32 %v1603_v11, %v155_v4 }
 0x1a2   :  { %v221_v7 = vsel %vm48_vm0, %v213_v5, 0  ;;  %v266_v23 = vpack.c.bf16 %v265_v14, %v264_v18  ;;  %v216_v24 = vpack.c.bf16 %v215_v13, %v214_v17  ;;  %v1379_v17 = vld [vmem:[%s1866_s3 + $0x30] sm:$0xff] }
 0x1a3   :  { %230 = vmatpush.bf16.xpose.msra.mxu3 %v221_v7  ;;  %277 = vmatpush.bf16.xpose.msrb.mxu0 %v221_v7 }
 0x1a4   :  { %v210_v15 = vpop.f32.mrf.mxu2 }
 0x1a5   :  { %v211_v16 = vadd.f32 %v1413_v3, %v210_v15 }
 0x1a7   :  { %v261_v21 = vmul.f32 %v1601_v9, %v211_v16  ;;  %v307_v22 = vmul.f32 %v1603_v11, %v211_v16  ;;  %v1380_v16 = vld [vmem:[%s1866_s3 + $0x38] sm:$0xff] }
 0x1a9   :  { %v308_v25 = vpack.c.bf16 %v307_v22, %v306_v20  ;;  %v262_v26 = vpack.c.bf16 %v261_v21, %v260_v19 }
 0x1aa   :  { %1214 = vmatmul.msk.bf16.vlgmr.msra.gmra.mxu3 %vm48_vm0, %v216_v24  ;;  %1215 = vmatmul.msk.bf16.vlgmr.msrb.gmra.mxu0 %vm48_vm0, %v266_v23 }
 0x1ab   :  { %320 = vmatpush.bf16.msrb.mxu1 %v308_v25  ;;  %337 = vmatpush.bf16.msrb.mxu2 %v262_v26  ;;  %v1414_v25 = vld [vmem:[%s1865_s2 + $0x5] ss:$0 sm:$0xff] }
 0x1ac   :  { %368 = vmatpush.bf16.msrb.mxu3 %v1380_v16  ;;  %v1386_v16 = vld [vmem:[%s1869_s5 + $0x18] sm:$0xff] }
 0x1af   :  { %527 = vmatpush.bf16.msra.mxu1 %v1386_v16 }
 0x1b0   :  { %369 = vmatpush.bf16.msrb.mxu3 %v1379_v17  ;;  %v1385_v17 = vld [vmem:[%s1869_s5 + $0x10] sm:$0xff] }
 0x1b3   :  { %528 = vmatpush.bf16.msra.mxu1 %v1385_v17 }
 0x227   :  { %v279_v28 = vpop.f32.mrf.mxu0 }
 0x228   :  { %v280_v29 = vadd.f32 %v279_v28, %v1618_v27 }
 0x22a   :  { %v284_v30 = vsel %vm237_vm12, %v280_v29, -inf }
 0x22b   :  { %285 = vmax.xlane.f32.xlu0 %v284_v30 }
 0x22d   :  { %v232_v31 = vpop.f32.mrf.mxu3 }
 0x22e   :  { %v233_v33 = vadd.f32 %v232_v31, %v1618_v27 }
 0x22f   :  { %v281_v34 = vpop.f32.mrf.mxu0 }
 0x230   :  { %v282_v35 = vadd.f32 %v281_v34, %v1625_v32  ;;  %v238_v36 = vsel %vm237_vm12, %v233_v33, -inf }
 0x231   :  { %239 = vmax.xlane.f32.xlu2 %v238_v36 }
 0x232   :  { %v287_v37 = vsel %vm237_vm12, %v282_v35, -inf }
 0x233   :  { %288 = vmax.xlane.f32.xlu1 %v287_v37 }
 0x235   :  { %v234_v38 = vpop.f32.mrf.mxu3 }
 0x236   :  { %v235_v39 = vadd.f32 %v234_v38, %v1625_v32 }
 0x238   :  { %v241_v40 = vsel %vm237_vm12, %v235_v39, -inf }
 0x239   :  { %242 = vmax.xlane.f32.xlu2 %v241_v40 }
 0x29e   :  { %v286_v41 = vpop.xlane.xlu0 %285 }
 0x29f   :  { %v290_v42 = vsub.f32 %v280_v29, %v286_v41 }
 0x2a1   :  { %v292_v43 = vmul.f32 1.442695, %v290_v42 }
 0x2a3   :  { %1439 = vpow2.f32 %v292_v43 }
 0x2a4   :  { %v240_v44 = vpop.xlane.xlu2 %239 }
 0x2a5   :  { %v244_v45 = vsub.f32 %v233_v33, %v240_v44 }
 0x2a6   :  { %v289_v46 = vpop.xlane.xlu1 %288 }
 0x2a7   :  { %v246_v47 = vmul.f32 1.442695, %v244_v45  ;;  %v291_v48 = vsub.f32 %v282_v35, %v289_v46 }
 0x2a9   :  { %v1440_v49 = vpop.eup %1439  ;;  %1441 = vpow2.f32 %v246_v47  ;;  %v294_v51 = vmul.f32 1.442695, %v291_v48  ;;  %v1381_v48 = vld [vmem:[%s1868_s4] sm:$0xff] }
 0x2aa   :  { %v296_v50 = vsel %vm237_vm12, %v1440_v49, 0.0 }
 0x2ab   :  { %297 = vadd.xlane.f32.xlu1 %v296_v50  ;;  %1443 = vpow2.f32 %v294_v51 }
 0x2ac   :  { %v243_v52 = vpop.xlane.xlu2 %242 }
 0x2ad   :  { %v245_v55 = vsub.f32 %v235_v39, %v243_v52 }
 0x2af   :  { %v1442_v56 = vpop.eup %1441  ;;  %v248_v57 = vmul.f32 1.442695, %v245_v55 }
 0x2b0   :  { %v250_v58 = vsel %vm237_vm12, %v1442_v56, 0.0 }
 0x2b1   :  { %1445 = vpow2.f32 %v248_v57  ;;  %251 = vadd.xlane.f32.xlu2 %v250_v58  ;;  %v1444_v59 = vpop.eup %1443 }
 0x2b2   :  { %v299_v61 = vsel %vm237_vm12, %v1444_v59, 0.0 }
 0x2b7   :  { %v1446_v60 = vpop.eup %1445 }
 0x2b8   :  { %v253_v62 = vsel %vm237_vm12, %v1446_v60, 0.0 }
 0x2b9   :  { %300 = vadd.xlane.f32.xlu2 %v299_v61  ;;  %254 = vadd.xlane.f32.xlu0 %v253_v62 }
 0x31e   :  { %v298_v0 = vpop.xlane.xlu1 %297 }
 0x324   :  { %v252_v63 = vpop.xlane.xlu2 %251 }
 0x325   :  { %1447 = vrcp.f32 %v252_v63 }
 0x326   :  { %1449 = vrcp.f32 %v298_v0 }
 0x32b   :  { %v1448_v3 = vpop.eup %1447 }
 0x32c   :  { %v255_v1 = vpop.xlane.xlu0 %254  ;;  %v301_v2 = vpop.xlane.xlu2 %300  ;;  %v258_v7 = vmul.f32 %v1448_v3, %v1442_v56 }
 0x32d   :  { %1451 = vrcp.f32 %v255_v1  ;;  %v1450_v4 = vpop.eup %1449 }
 0x32e   :  { %1453 = vrcp.f32 %v301_v2  ;;  %v304_v12 = vmul.f32 %v1450_v4, %v1440_v49  ;;  %v1415_v2 = vld [vmem:[%s1865_s2 + $0x6] ss:$0 sm:$0xff] }
 0x333   :  { %v1452_v5 = vpop.eup %1451 }
 0x334   :  { %v1454_v6 = vpop.eup %1453  ;;  %v259_v8 = vmul.f32 %v1452_v5, %v1446_v60 }
 0x335   :  { %v305_v13 = vmul.f32 %v1454_v6, %v1444_v59  ;;  %v1416_v6 = vld [vmem:[%s1865_s2 + $0x7] ss:$0 sm:$0xff] }
 0x336   :  { %v263_v14 = vpack.c.bf16 %v259_v8, %v258_v7 }
 0x337   :  { %v309_v15 = vpack.c.bf16 %v305_v13, %v304_v12 }
 0x338   :  { %1217 = vmatmul.msk.bf16.vlgmr.msrb.gmra.mxu2 %vm237_vm12, %v263_v14 }
 0x339   :  { %1216 = vmatmul.msk.bf16.vlgmr.msrb.gmra.mxu1 %vm237_vm12, %v309_v15 }
 0x3b6   :  { %v322_v18 = vpop.f32.mrf.mxu1 }
 0x3bb   :  { %v339_v19 = vpop.f32.mrf.mxu2 }
 0x3bc   :  { %v340_v22 = vadd.f32 %v339_v19, %v322_v18  ;;  %v1384_v18 = vld [vmem:[%s1869_s5 + $0x8] sm:$0xff] }
 0x3bd   :  { %v1417_v19 = vld [vmem:[%s1865_s2 + $0x8] ss:$0 sm:$0xff]  ;;  %529 = vmatpush.bf16.msra.mxu1 %v1384_v18 }
 0x3be   :  { %v324_v20 = vpop.f32.mrf.mxu1 }
 0x3c3   :  { %v341_v21 = vpop.f32.mrf.mxu2 }
 0x3c4   :  { %v342_v23 = vadd.f32 %v341_v21, %v324_v20  ;;  %v1383_v21 = vld [vmem:[%s1869_s5] sm:$0xff] }
 0x3c5   :  { %530 = vmatpush.bf16.msra.mxu1 %v1383_v21 }
 0x3c6   :  { %v344_v24 = vpack.c.bf16 %v342_v23, %v340_v22 }
 0x3c8   :  { %1226 = vmatmul.msk.bf16.vlgmr.msrb.gmra.mxu3 %vm48_vm0, %v344_v24 }
 0x44b   :  { %v371_v26 = vpop.f32.mrf.mxu3 }
 0x44c   :  { %v372_v28 = vadd.f32 %v1414_v25, %v371_v26 }
 0x44e   :  { %v376_v29 = vadd.f32 %v372_v28, %v1582_v53 }
 0x450   :  { %v380_v30 = vsel %vm48_vm0, %v376_v29, 0.0 }
 0x451   :  { %381 = vadd.xlane.f32.xlu0 %v380_v30 }
 0x453   :  { %v373_v31 = vpop.f32.mrf.mxu3 }
 0x454   :  { %v374_v33 = vadd.f32 %v1414_v25, %v373_v31 }
 0x456   :  { %v377_v34 = vadd.f32 %v374_v33, %v1584_v54  ;;  %v1382_v54 = vld [vmem:[%s1868_s4 + $0x8] sm:$0xff] }
 0x457   :  { %458 = vmatpush.bf16.msra.mxu0 %v1382_v54  ;;  %v1418_v54 = vld [vmem:[%s1865_s2 + $0x9] ss:$0 sm:$0xff] }
 0x458   :  { %v383_v35 = vsel %vm48_vm0, %v377_v34, 0.0 }
 0x459   :  { %384 = vadd.xlane.f32.xlu1 %v383_v35 }
 0x45b   :  { %459 = vmatpush.bf16.msra.mxu0 %v1381_v48 }
 0x4c4   :  { %v382_v36 = vpop.xlane.xlu0 %381 }
 0x4c5   :  { %v386_v37 = vmul.f32 %v382_v36, %v1550_v10 }
 0x4c7   :  { %v388_v38 = vsub.f32 %v376_v29, %v386_v37 }
 0x4c9   :  { %v390_v39 = vmul.f32 %v388_v38, %v388_v38 }
 0x4cb   :  { %v392_v40 = vsel %vm48_vm0, %v390_v39, 0.0 }
 0x4cc   :  { %v385_v41 = vpop.xlane.xlu1 %384  ;;  %393 = vadd.xlane.f32.xlu2 %v392_v40 }
 0x4cd   :  { %v387_v53 = vmul.f32 %v385_v41, %v1550_v10 }
 0x4cf   :  { %v389_v42 = vsub.f32 %v377_v34, %v387_v53 }
 0x4d1   :  { %v391_v43 = vmul.f32 %v389_v42, %v389_v42 }
 0x4d3   :  { %v395_v44 = vsel %vm48_vm0, %v391_v43, 0.0 }
 0x4d4   :  { %396 = vadd.xlane.f32.xlu0 %v395_v44 }
 0x53f   :  { %v394_v45 = vpop.xlane.xlu2 %393 }
 0x540   :  { %v398_v46 = vmul.f32 %v394_v45, %v1550_v10 }
 0x542   :  { %v400_v47 = vadd.f32 1e-12, %v398_v46 }
 0x544   :  { %1455 = vrsqrt.f32 %v400_v47  ;;  %vm408_vm14 = vweird.f32 %v400_v47 }
 0x547   :  { %v397_v49 = vpop.xlane.xlu0 %396 }
 0x548   :  { %v399_v50 = vmul.f32 %v397_v49, %v1550_v10 }
 0x54a   :  { %v1456_v51 = vpop.eup %1455  ;;  %v401_v52 = vadd.f32 1e-12, %v399_v50 }
 0x54b   :  { %v403_v55 = vmul.f32 %v1456_v51, %v400_v47  ;;  %vm409_vm13 = vweird.f32 %v1456_v51 }
 0x54c   :  { %1457 = vrsqrt.f32 %v401_v52  ;;  %vm410_vm15 = vmor %vm408_vm14, %vm409_vm13  ;;  %vm418_vm2 = vweird.f32 %v401_v52 }
 0x54d   :  { %v404_v56 = vmul.f32 %v1456_v51, %v403_v55 }
 0x54f   :  { %v405_v57 = vmul.f32 0.5, %v404_v56 }
 0x551   :  { %v406_v58 = vsub.f32 1.5, %v405_v57 }
 0x552   :  { %v1458_v59 = vpop.eup %1457 }
 0x553   :  { %v407_v60 = vmul.f32 %v1456_v51, %v406_v58  ;;  %v413_v61 = vmul.f32 %v1458_v59, %v401_v52  ;;  %vm419_vm1 = vweird.f32 %v1458_v59 }
 0x554   :  { %vm420_vm3 = vmor %vm418_vm2, %vm419_vm1 }
 0x555   :  { %v414_v62 = vmul.f32 %v1458_v59, %v413_v61  ;;  %v411_v63 = vsel %vm410_vm15, %v1456_v51, %v407_v60 }
 0x556   :  { %v422_v3 = vmul.f32 %v411_v63, %v388_v38 }
 0x557   :  { %v415_v0 = vmul.f32 0.5, %v414_v62 }
 0x558   :  { %v425_v7 = vmul.f32 %v1415_v2, %v422_v3  ;;  %v1392_v3 = vld [vmem:[%s1866_s3 + $0x68] sm:$0xff] }
 0x559   :  { %v416_v1 = vsub.f32 1.5, %v415_v0  ;;  %691 = vmatpush.bf16.msrb.mxu0 %v1392_v3 }
 0x55a   :  { %v428_v13 = vadd.f32 %v1416_v6, %v425_v7  ;;  %v1387_v7 = vld [vmem:[%s1866_s3 + $0x40] sm:$0xff] }
 0x55b   :  { %v417_v4 = vmul.f32 %v1458_v59, %v416_v1  ;;  %v1388_v1 = vld [vmem:[%s1866_s3 + $0x48] sm:$0xff] }
 0x55c   :  { %635 = vmatpush.bf16.msra.mxu2 %v1388_v1 }
 0x55d   :  { %v421_v5 = vsel %vm420_vm3, %v1458_v59, %v417_v4 }
 0x55e   :  { %v423_v8 = vmul.f32 %v421_v5, %v389_v42 }
 0x560   :  { %v426_v12 = vmul.f32 %v1415_v2, %v423_v8  ;;  %v1390_v2 = vld [vmem:[%s1866_s3 + $0x58] sm:$0xff]  ;;  %v1389_v8 = vld [vmem:[%s1866_s3 + $0x50] sm:$0xff]  ;;  %636 = vmatpush.bf16.msra.mxu2 %v1387_v7 }
 0x561   :  { %663 = vmatpush.bf16.msra.mxu3 %v1390_v2 }
 0x562   :  { %v429_v14 = vadd.f32 %v1416_v6, %v426_v12  ;;  %v1391_v12 = vld [vmem:[%s1866_s3 + $0x60] sm:$0xff] }
 0x563   :  { %692 = vmatpush.bf16.msrb.mxu0 %v1391_v12 }
 0x564   :  { %v434_v15 = vpack.c.bf16 %v429_v14, %v428_v13 }
 0x565   :  { %664 = vmatpush.bf16.msra.mxu3 %v1389_v8 }
 0x566   :  { %1235 = vmatmul.msk.bf16.vlgmr.msra.gmra.mxu0 %vm48_vm0, %v434_v15 }
 0x5e3   :  { %v461_v20 = vpop.f32.mrf.mxu0 }
 0x5e4   :  { %v462_v22 = vadd.f32 %v1417_v19, %v461_v20 }
 0x5e6   :  { %v466_v23 = vmul.f32 %v462_v22, %v462_v22 }
 0x5e8   :  { %v468_v24 = vmul.f32 %v466_v23, %v462_v22 }
 0x5ea   :  { %v470_v25 = vmul.f32 0.044715, %v468_v24 }
 0x5eb   :  { %v463_v26 = vpop.f32.mrf.mxu0 }
 0x5ec   :  { %v472_v28 = vadd.f32 %v470_v25, %v462_v22  ;;  %v464_v29 = vadd.f32 %v1417_v19, %v463_v26 }
 0x5ee   :  { %v474_v30 = vmul.f32 0.7978846, %v472_v28  ;;  %v467_v31 = vmul.f32 %v464_v29, %v464_v29 }
 0x5f0   :  { %v469_v33 = vmul.f32 %v467_v31, %v464_v29  ;;  %1459 = vtanh.f32 %v474_v30 }
 0x5f2   :  { %v471_v34 = vmul.f32 0.044715, %v469_v33 }
 0x5f4   :  { %v473_v35 = vadd.f32 %v471_v34, %v464_v29  ;;  %v1420_v34 = vld [vmem:[%s1865_s2 + $0xb] ss:$0 sm:$0xff] }
 0x5f6   :  { %v475_v36 = vmul.f32 0.7978846, %v473_v35  ;;  %v1460_v37 = vpop.eup %1459 }
 0x5f7   :  { %v478_v38 = vadd.f32 1.0, %v1460_v37 }
 0x5f8   :  { %1461 = vtanh.f32 %v475_v36 }
 0x5f9   :  { %v480_v40 = vmul.f32 0.5, %v478_v38 }
 0x5fb   :  { %v482_v42 = vmul.f32 %v480_v40, %v462_v22 }
 0x5fe   :  { %v1462_v39 = vpop.eup %1461 }
 0x5ff   :  { %v479_v41 = vadd.f32 1.0, %v1462_v39 }
 0x601   :  { %v481_v53 = vmul.f32 0.5, %v479_v41 }
 0x603   :  { %v483_v43 = vmul.f32 %v481_v53, %v464_v29  ;;  %v1419_v29 = vld [vmem:[%s1865_s2 + $0xa] ss:$0 sm:$0xff]  ;;  %v1421_v53 = vld [vmem:[%s1865_s2 + $0xe] ss:$0 sm:$0xff] }
 0x605   :  { %v492_v44 = vpack.c.bf16 %v483_v43, %v482_v42 }
 0x607   :  { %1252 = vmatmul.msk.bf16.vlgmr.msra.gmra.mxu1 %vm519_vm4, %v492_v44 }
 0x684   :  { %v532_v45 = vpop.f32.mrf.mxu1 }
 0x685   :  { %v533_v46 = vadd.f32 %v1418_v54, %v532_v45 }
 0x687   :  { %v537_v47 = vadd.f32 %v533_v46, %v428_v13  ;;  %v1423_v46 = vld [vmem:[%s1865_s2 + $0xd] ss:$0 sm:$0xff] }
 0x689   :  { %v541_v48 = vsel %vm48_vm0, %v537_v47, 0.0 }
 0x68a   :  { %542 = vadd.xlane.f32.xlu1 %v541_v48 }
 0x68c   :  { %v534_v49 = vpop.f32.mrf.mxu1 }
 0x68d   :  { %v535_v50 = vadd.f32 %v1418_v54, %v534_v49 }
 0x68f   :  { %v538_v51 = vadd.f32 %v535_v50, %v429_v14 }
 0x691   :  { %v544_v52 = vsel %vm48_vm0, %v538_v51, 0.0 }
 0x692   :  { %545 = vadd.xlane.f32.xlu2 %v544_v52 }
 0x6fd   :  { %v543_v55 = vpop.xlane.xlu1 %542 }
 0x6fe   :  { %v547_v56 = vmul.f32 %v543_v55, %v1550_v10 }
 0x700   :  { %v549_v57 = vsub.f32 %v537_v47, %v547_v56 }
 0x702   :  { %v551_v58 = vmul.f32 %v549_v57, %v549_v57 }
 0x704   :  { %v553_v59 = vsel %vm48_vm0, %v551_v58, 0.0 }
 0x705   :  { %v546_v60 = vpop.xlane.xlu2 %545  ;;  %554 = vadd.xlane.f32.xlu0 %v553_v59 }
 0x706   :  { %v548_v61 = vmul.f32 %v546_v60, %v1550_v10 }
 0x708   :  { %v550_v62 = vsub.f32 %v538_v51, %v548_v61 }
 0x70a   :  { %v552_v63 = vmul.f32 %v550_v62, %v550_v62 }
 0x70c   :  { %v556_v0 = vsel %vm48_vm0, %v552_v63, 0.0 }
 0x70d   :  { %557 = vadd.xlane.f32.xlu1 %v556_v0 }
 0x778   :  { %v555_v4 = vpop.xlane.xlu0 %554 }
 0x779   :  { %v559_v5 = vmul.f32 %v555_v4, %v1550_v10 }
 0x77b   :  { %v561_v6 = vadd.f32 1e-12, %v559_v5 }
 0x77d   :  { %1463 = vrsqrt.f32 %v561_v6  ;;  %vm569_vm6 = vweird.f32 %v561_v6 }
 0x780   :  { %v558_v13 = vpop.xlane.xlu1 %557 }
 0x781   :  { %v560_v14 = vmul.f32 %v558_v13, %v1550_v10 }
 0x783   :  { %v1464_v15 = vpop.eup %1463  ;;  %v562_v16 = vadd.f32 1e-12, %v560_v14 }
 0x784   :  { %v564_v17 = vmul.f32 %v1464_v15, %v561_v6  ;;  %vm570_vm5 = vweird.f32 %v1464_v15 }
 0x785   :  { %1465 = vrsqrt.f32 %v562_v16  ;;  %vm571_vm7 = vmor %vm569_vm6, %vm570_vm5  ;;  %vm579_vm9 = vweird.f32 %v562_v16 }
 0x786   :  { %v565_v18 = vmul.f32 %v1464_v15, %v564_v17 }
 0x788   :  { %v566_v19 = vmul.f32 0.5, %v565_v18 }
 0x78a   :  { %v567_v20 = vsub.f32 1.5, %v566_v19 }
 0x78b   :  { %v1466_v21 = vpop.eup %1465 }
 0x78c   :  { %v568_v22 = vmul.f32 %v1464_v15, %v567_v20  ;;  %v574_v23 = vmul.f32 %v1466_v21, %v562_v16  ;;  %vm580_vm8 = vweird.f32 %v1466_v21 }
 0x78d   :  { %vm581_vm10 = vmor %vm579_vm9, %vm580_vm8 }
 0x78e   :  { %v575_v24 = vmul.f32 %v1466_v21, %v574_v23  ;;  %v572_v25 = vsel %vm571_vm7, %v1464_v15, %v568_v22 }
 0x78f   :  { %v583_v30 = vmul.f32 %v572_v25, %v549_v57  ;;  %v1422_v57 = vld [vmem:[%s1865_s2 + $0xc] ss:$0 sm:$0xff] }
 0x790   :  { %v576_v26 = vmul.f32 0.5, %v575_v24 }
 0x791   :  { %v586_v35 = vmul.f32 %v1419_v29, %v583_v30 }
 0x792   :  { %v577_v28 = vsub.f32 1.5, %v576_v26 }
 0x793   :  { %v1723_v38 = vadd.f32 %v1420_v34, %v586_v35 }
 0x794   :  { %v578_v31 = vmul.f32 %v1466_v21, %v577_v28 }
 0x796   :  { %v582_v33 = vsel %vm581_vm10, %v1466_v21, %v578_v31 }
 0x797   :  { %v584_v36 = vmul.f32 %v582_v33, %v550_v62 }
 0x799   :  { %v587_v37 = vmul.f32 %v1419_v29, %v584_v36 }
 0x79b   :  { %v1725_v39 = vadd.f32 %v1420_v34, %v587_v37 }
 0x79d   :  { %v611_v40 = vpack.c.bf16 %v1725_v39, %v1723_v38 }
 0x79f   :  { %1277 = vmatmul.msk.bf16.vlgmr.msra.gmra.mxu2 %vm48_vm0, %v611_v40  ;;  %1286 = vmatmul.msk.bf16.vlgmr.msra.gmra.mxu3 %vm48_vm0, %v611_v40 }
 0x7a0   :  { %1295 = vmatmul.msk.bf16.vlgmr.msrb.gmra.mxu0 %vm48_vm0, %v611_v40 }
 0x81d   :  { %v694_v41 = vpop.f32.mrf.mxu0 }
 0x81e   :  { %v695_v44 = vadd.f32 %v1421_v53, %v694_v41 }
 0x820   :  { %v745_v47 = vmul.f32 %v1601_v9, %v695_v44  ;;  %v791_v48 = vmul.f32 %v1603_v11, %v695_v44 }
 0x822   :  { %v638_v42 = vpop.f32.mrf.mxu2  ;;  %v666_v43 = vpop.f32.mrf.mxu3 }
 0x823   :  { %v667_v58 = vadd.f32 %v1423_v46, %v666_v43  ;;  %v639_v62 = vadd.f32 %v1422_v57, %v638_v42 }
 0x825   :  { %v696_v54 = vpop.f32.mrf.mxu0  ;;  %v700_v2 = vmul.f32 %v1601_v9, %v639_v62  ;;  %v749_v3 = vmul.f32 %v1603_v11, %v639_v62 }
 0x826   :  { %v697_v45 = vadd.f32 %v1421_v53, %v696_v54 }
 0x828   :  { %v746_v49 = vmul.f32 %v1601_v9, %v697_v45  ;;  %v792_v50 = vmul.f32 %v1603_v11, %v697_v45 }
 0x82a   :  { %v747_v51 = vpack.c.bf16 %v746_v49, %v745_v47  ;;  %v793_v52 = vpack.c.bf16 %v792_v50, %v791_v48  ;;  %v640_v55 = vpop.f32.mrf.mxu2  ;;  %v668_v56 = vpop.f32.mrf.mxu3 }
 0x82b   :  { %v669_v59 = vadd.f32 %v1423_v46, %v668_v56  ;;  %v641_v60 = vadd.f32 %v1422_v57, %v640_v55  ;;  %v1394_v55 = vld [vmem:[%s1866_s3 + $0x78] sm:$0xff]  ;;  %v1393_v56 = vld [vmem:[%s1866_s3 + $0x70] sm:$0xff] }
 0x82c   :  { %805 = vmatpush.bf16.msrb.mxu3 %v793_v52  ;;  %822 = vmatpush.bf16.msra.mxu0 %v747_v51 }
 0x82d   :  { %v699_v61 = vpack.c.bf16 %v669_v59, %v667_v58  ;;  %v701_v0 = vmul.f32 %v1601_v9, %v641_v60  ;;  %v750_v1 = vmul.f32 %v1603_v11, %v641_v60 }
 0x82f   :  { %v707_v63 = vsel %vm48_vm0, %v699_v61, 0  ;;  %v702_v4 = vpack.c.bf16 %v701_v0, %v700_v2  ;;  %v751_v5 = vpack.c.bf16 %v750_v1, %v749_v3  ;;  %v1424_v0 = vld [vmem:[%s1865_s2 + $0xf] ss:$0 sm:$0xff] }
 0x830   :  { %716 = vmatpush.bf16.xpose.msrb.mxu1 %v707_v63  ;;  %762 = vmatpush.bf16.xpose.msrb.mxu2 %v707_v63 }
 0x837   :  { %1296 = vmatmul.msk.bf16.vlgmr.msrb.gmra.mxu1 %vm48_vm0, %v702_v4  ;;  %1297 = vmatmul.msk.bf16.vlgmr.msrb.gmra.mxu2 %vm48_vm0, %v751_v5 }
 0x838   :  { %853 = vmatpush.bf16.msra.mxu1 %v1394_v55 }
 0x83c   :  { %854 = vmatpush.bf16.msra.mxu1 %v1393_v56  ;;  %v1397_v56 = vld [vmem:[%s1869_s5 + $0x20] sm:$0xff] }
 0x8b4   :  { %v718_v6 = vpop.f32.mrf.mxu1 }
 0x8b5   :  { %v719_v7 = vadd.f32 %v718_v6, %v1618_v27 }
 0x8b7   :  { %v723_v8 = vsel %vm237_vm12, %v719_v7, -inf }
 0x8b8   :  { %724 = vmax.xlane.f32.xlu1 %v723_v8 }
 0x8ba   :  { %v764_v12 = vpop.f32.mrf.mxu2 }
 0x8bb   :  { %v765_v13 = vadd.f32 %v764_v12, %v1618_v27 }
 0x8bc   :  { %v720_v9 = vpop.f32.mrf.mxu1 }
 0x8bd   :  { %v769_v14 = vsel %vm237_vm12, %v765_v13, -inf  ;;  %v721_v11 = vadd.f32 %v720_v9, %v1625_v32 }
 0x8be   :  { %770 = vmax.xlane.f32.xlu2 %v769_v14 }
 0x8bf   :  { %v726_v18 = vsel %vm237_vm12, %v721_v11, -inf }
 0x8c2   :  { %v766_v15 = vpop.f32.mrf.mxu2 }
 0x8c3   :  { %v767_v16 = vadd.f32 %v766_v15, %v1625_v32 }
 0x8c5   :  { %v772_v17 = vsel %vm237_vm12, %v767_v16, -inf }
 0x8c6   :  { %773 = vmax.xlane.f32.xlu0 %v772_v17  ;;  %727 = vmax.xlane.f32.xlu2 %v726_v18 }
 0x92b   :  { %v725_v19 = vpop.xlane.xlu1 %724 }
 0x92c   :  { %v729_v20 = vsub.f32 %v719_v7, %v725_v19 }
 0x92e   :  { %v731_v21 = vmul.f32 1.442695, %v729_v20 }
 0x930   :  { %1467 = vpow2.f32 %v731_v21 }
 0x931   :  { %v771_v27 = vpop.xlane.xlu2 %770 }
 0x932   :  { %v775_v22 = vsub.f32 %v765_v13, %v771_v27  ;;  %v1395_v27 = vld [vmem:[%s1868_s4 + $0x10] sm:$0xff] }
 0x934   :  { %v777_v23 = vmul.f32 1.442695, %v775_v22 }
 0x936   :  { %v1468_v24 = vpop.eup %1467  ;;  %1469 = vpow2.f32 %v777_v23 }
 0x937   :  { %v735_v25 = vsel %vm237_vm12, %v1468_v24, 0.0 }
 0x938   :  { %736 = vadd.xlane.f32.xlu2 %v735_v25 }
 0x939   :  { %v774_v26 = vpop.xlane.xlu0 %773  ;;  %v728_v32 = vpop.xlane.xlu2 %727 }
 0x93a   :  { %v776_v28 = vsub.f32 %v767_v16, %v774_v26  ;;  %v730_v29 = vsub.f32 %v721_v11, %v728_v32 }
 0x93c   :  { %v1470_v30 = vpop.eup %1469  ;;  %v779_v31 = vmul.f32 1.442695, %v776_v28  ;;  %v733_v33 = vmul.f32 1.442695, %v730_v29 }
 0x93d   :  { %v781_v34 = vsel %vm237_vm12, %v1470_v30, 0.0 }
 0x93e   :  { %1471 = vpow2.f32 %v779_v31  ;;  %782 = vadd.xlane.f32.xlu0 %v781_v34 }
 0x93f   :  { %1473 = vpow2.f32 %v733_v33 }
 0x944   :  { %v1472_v35 = vpop.eup %1471 }
 0x945   :  { %v1474_v36 = vpop.eup %1473  ;;  %v784_v37 = vsel %vm237_vm12, %v1472_v35, 0.0 }
 0x946   :  { %v738_v40 = vsel %vm237_vm12, %v1474_v36, 0.0  ;;  %785 = vadd.xlane.f32.xlu1 %v784_v37 }
 0x947   :  { %739 = vadd.xlane.f32.xlu0 %v738_v40  ;;  %v1425_v40 = vld [vmem:[%s1865_s2 + $0x10] ss:$0 sm:$0xff] }
 0x9ab   :  { %v737_v53 = vpop.xlane.xlu2 %736 }
 0x9b1   :  { %v783_v41 = vpop.xlane.xlu0 %782 }
 0x9b2   :  { %1475 = vrcp.f32 %v783_v41 }
 0x9b3   :  { %1477 = vrcp.f32 %v737_v53 }
 0x9b8   :  { %v1476_v44 = vpop.eup %1475 }
 0x9b9   :  { %v786_v42 = vpop.xlane.xlu1 %785  ;;  %v1478_v54 = vpop.eup %1477  ;;  %v789_v47 = vmul.f32 %v1476_v44, %v1470_v30 }
 0x9ba   :  { %v740_v43 = vpop.xlane.xlu0 %739  ;;  %1479 = vrcp.f32 %v786_v42  ;;  %v743_v49 = vmul.f32 %v1478_v54, %v1468_v24 }
 0x9bb   :  { %1481 = vrcp.f32 %v740_v43  ;;  %v1426_v43 = vld [vmem:[%s1865_s2 + $0x11] ss:$0 sm:$0xff] }
 0x9c0   :  { %v1480_v45 = vpop.eup %1479 }
 0x9c1   :  { %v1482_v46 = vpop.eup %1481  ;;  %v790_v48 = vmul.f32 %v1480_v45, %v1472_v35 }
 0x9c2   :  { %v744_v50 = vmul.f32 %v1482_v46, %v1474_v36 }
 0x9c3   :  { %v794_v51 = vpack.c.bf16 %v790_v48, %v789_v47 }
 0x9c4   :  { %v748_v52 = vpack.c.bf16 %v744_v50, %v743_v49  ;;  %v1400_v49 = vld [vmem:[%s1869_s5 + $0x38] sm:$0xff]  ;;  %v1399_v50 = vld [vmem:[%s1869_s5 + $0x30] sm:$0xff] }
 0x9c5   :  { %1298 = vmatmul.msk.bf16.vlgmr.msrb.gmra.mxu3 %vm237_vm12, %v794_v51  ;;  %v1398_v51 = vld [vmem:[%s1869_s5 + $0x28] sm:$0xff] }
 0x9c6   :  { %1299 = vmatmul.msk.bf16.vlgmr.msra.gmra.mxu0 %vm237_vm12, %v748_v52  ;;  %1013 = vmatpush.bf16.msra.mxu3 %v1400_v49  ;;  %v1427_v52 = vld [vmem:[%s1865_s2 + $0x12] ss:$0 sm:$0xff] }
 0x9ca   :  { %1014 = vmatpush.bf16.msra.mxu3 %v1399_v50 }
 0x9ce   :  { %1015 = vmatpush.bf16.msra.mxu3 %v1398_v51 }
 0x9d2   :  { %1016 = vmatpush.bf16.msra.mxu3 %v1397_v56 }
 0xa43   :  { %v824_v57 = vpop.f32.mrf.mxu0 }
 0xa48   :  { %v807_v58 = vpop.f32.mrf.mxu3 }
 0xa49   :  { %v825_v61 = vadd.f32 %v824_v57, %v807_v58 }
 0xa4b   :  { %v826_v59 = vpop.f32.mrf.mxu0 }
 0xa50   :  { %v809_v60 = vpop.f32.mrf.mxu3 }
 0xa51   :  { %v827_v62 = vadd.f32 %v826_v59, %v809_v60 }
 0xa53   :  { %v829_v63 = vpack.c.bf16 %v827_v62, %v825_v61 }
 0xa55   :  { %1308 = vmatmul.msk.bf16.vlgmr.msra.gmra.mxu1 %vm48_vm0, %v829_v63 }
 0xad2   :  { %v856_v1 = vpop.f32.mrf.mxu1 }
 0xad3   :  { %v857_v2 = vadd.f32 %v1424_v0, %v856_v1 }
 0xad5   :  { %v861_v3 = vadd.f32 %v857_v2, %v1723_v38 }
 0xad7   :  { %v865_v4 = vsel %vm48_vm0, %v861_v3, 0.0 }
 0xad8   :  { %866 = vadd.xlane.f32.xlu1 %v865_v4 }
 0xada   :  { %v858_v5 = vpop.f32.mrf.mxu1 }
 0xadb   :  { %v859_v6 = vadd.f32 %v1424_v0, %v858_v5 }
 0xadd   :  { %v862_v7 = vadd.f32 %v859_v6, %v1725_v39  ;;  %v1396_v39 = vld [vmem:[%s1868_s4 + $0x18] sm:$0xff] }
 0xade   :  { %944 = vmatpush.bf16.msra.mxu2 %v1396_v39 }
 0xadf   :  { %v868_v8 = vsel %vm48_vm0, %v862_v7, 0.0 }
 0xae0   :  { %869 = vadd.xlane.f32.xlu2 %v868_v8 }
 0xae2   :  { %945 = vmatpush.bf16.msra.mxu2 %v1395_v27 }
 0xb4b   :  { %v867_v12 = vpop.xlane.xlu1 %866 }
 0xb4c   :  { %v871_v13 = vmul.f32 %v867_v12, %v1550_v10 }
 0xb4e   :  { %v873_v14 = vsub.f32 %v861_v3, %v871_v13 }
 0xb50   :  { %v875_v9 = vmul.f32 %v873_v14, %v873_v14 }
 0xb52   :  { %v877_v11 = vsel %vm48_vm0, %v875_v9, 0.0 }
 0xb53   :  { %v870_v15 = vpop.xlane.xlu2 %869  ;;  %878 = vadd.xlane.f32.xlu0 %v877_v11 }
 0xb54   :  { %v872_v38 = vmul.f32 %v870_v15, %v1550_v10 }
 0xb56   :  { %v874_v16 = vsub.f32 %v862_v7, %v872_v38  ;;  %v1428_v38 = vld [vmem:[%s1865_s2 + $0x13] ss:$0 sm:$0xff] }
 0xb58   :  { %v876_v17 = vmul.f32 %v874_v16, %v874_v16 }
 0xb5a   :  { %v880_v18 = vsel %vm48_vm0, %v876_v17, 0.0 }
 0xb5b   :  { %881 = vadd.xlane.f32.xlu1 %v880_v18 }
 0xbc6   :  { %v879_v19 = vpop.xlane.xlu0 %878 }
 0xbc7   :  { %v883_v20 = vmul.f32 %v879_v19, %v1550_v10 }
 0xbc9   :  { %v885_v21 = vadd.f32 1e-12, %v883_v20 }
 0xbcb   :  { %1483 = vrsqrt.f32 %v885_v21  ;;  %vm893_vm12 = vweird.f32 %v885_v21 }
 0xbce   :  { %v882_v22 = vpop.xlane.xlu1 %881 }
 0xbcf   :  { %v884_v23 = vmul.f32 %v882_v22, %v1550_v10 }
 0xbd1   :  { %v1484_v24 = vpop.eup %1483  ;;  %v886_v25 = vadd.f32 1e-12, %v884_v23 }
 0xbd2   :  { %v888_v26 = vmul.f32 %v1484_v24, %v885_v21  ;;  %vm894_vm11 = vweird.f32 %v1484_v24 }
 0xbd3   :  { %1485 = vrsqrt.f32 %v886_v25  ;;  %vm895_vm13 = vmor %vm893_vm12, %vm894_vm11  ;;  %vm903_vm15 = vweird.f32 %v886_v25 }
 0xbd4   :  { %v889_v32 = vmul.f32 %v1484_v24, %v888_v26 }
 0xbd6   :  { %v890_v28 = vmul.f32 0.5, %v889_v32 }
 0xbd8   :  { %v891_v29 = vsub.f32 1.5, %v890_v28 }
 0xbd9   :  { %v1486_v30 = vpop.eup %1485 }
 0xbda   :  { %v892_v31 = vmul.f32 %v1484_v24, %v891_v29  ;;  %v898_v33 = vmul.f32 %v1486_v30, %v886_v25  ;;  %vm904_vm14 = vweird.f32 %v1486_v30 }
 0xbdb   :  { %vm905_vm1 = vmor %vm903_vm15, %vm904_vm14 }
 0xbdc   :  { %v899_v34 = vmul.f32 %v1486_v30, %v898_v33  ;;  %v896_v35 = vsel %vm895_vm13, %v1484_v24, %v892_v31  ;;  %v1402_v33 = vld [vmem:[%s1870_s6 + $0x8] sm:$0xff] }
 0xbdd   :  { %v907_v41 = vmul.f32 %v896_v35, %v873_v14  ;;  %1105 = vmatpush.bf16.msrb.mxu0 %v1402_v33 }
 0xbde   :  { %v900_v36 = vmul.f32 0.5, %v899_v34 }
 0xbdf   :  { %v910_v44 = vmul.f32 %v1425_v40, %v907_v41 }
 0xbe0   :  { %v901_v37 = vsub.f32 1.5, %v900_v36 }
 0xbe1   :  { %v913_v46 = vadd.f32 %v1426_v43, %v910_v44 }
 0xbe2   :  { %v902_v53 = vmul.f32 %v1486_v30, %v901_v37  ;;  %v1401_v37 = vld [vmem:[%s1870_s6] sm:$0xff] }
 0xbe3   :  { %1106 = vmatpush.bf16.msrb.mxu0 %v1401_v37 }
 0xbe4   :  { %v906_v42 = vsel %vm905_vm1, %v1486_v30, %v902_v53 }
 0xbe5   :  { %v908_v54 = vmul.f32 %v906_v42, %v874_v16 }
 0xbe7   :  { %v911_v45 = vmul.f32 %v1425_v40, %v908_v54 }
 0xbe9   :  { %v914_v47 = vadd.f32 %v1426_v43, %v911_v45 }
 0xbeb   :  { %v920_v48 = vpack.c.bf16 %v914_v47, %v913_v46 }
 0xbed   :  { %1321 = vmatmul.msk.bf16.vlgmr.msra.gmra.mxu2 %vm48_vm0, %v920_v48 }
 0xc70   :  { %v947_v55 = vpop.f32.mrf.mxu2 }
 0xc71   :  { %v948_v57 = vadd.f32 %v1427_v52, %v947_v55 }
 0xc73   :  { %v952_v58 = vmul.f32 %v948_v57, %v948_v57 }
 0xc75   :  { %v954_v59 = vmul.f32 %v952_v58, %v948_v57  ;;  %v1430_v58 = vld [vmem:[%s1865_s2 + $0x15] ss:$0 sm:$0xff] }
 0xc77   :  { %v956_v60 = vmul.f32 0.044715, %v954_v59 }
 0xc78   :  { %v949_v61 = vpop.f32.mrf.mxu2 }
 0xc79   :  { %v958_v62 = vadd.f32 %v956_v60, %v948_v57  ;;  %v950_v63 = vadd.f32 %v1427_v52, %v949_v61 }
 0xc7b   :  { %v960_v0 = vmul.f32 0.7978846, %v958_v62  ;;  %v953_v1 = vmul.f32 %v950_v63, %v950_v63 }
 0xc7d   :  { %v955_v2 = vmul.f32 %v953_v1, %v950_v63  ;;  %1487 = vtanh.f32 %v960_v0  ;;  %v1406_v1 = vld [vmem:[%s1871_s7 + $0x18] sm:$0xff] }
 0xc7e   :  { %1157 = vmatpush.bf16.msrb.mxu1 %v1406_v1 }
 0xc7f   :  { %v957_v3 = vmul.f32 0.044715, %v955_v2  ;;  %v1405_v2 = vld [vmem:[%s1871_s7 + $0x10] sm:$0xff] }
 0xc81   :  { %v959_v4 = vadd.f32 %v957_v3, %v950_v63  ;;  %v1404_v3 = vld [vmem:[%s1871_s7 + $0x8] sm:$0xff] }
 0xc82   :  { %1158 = vmatpush.bf16.msrb.mxu1 %v1405_v2 }
 0xc83   :  { %v961_v5 = vmul.f32 0.7978846, %v959_v4  ;;  %v1488_v6 = vpop.eup %1487  ;;  %v1403_v4 = vld [vmem:[%s1871_s7] sm:$0xff] }
 0xc84   :  { %v964_v7 = vadd.f32 1.0, %v1488_v6  ;;  %v1431_v6 = vld [vmem:[%s1865_s2 + $0x16] ss:$0 sm:$0xff] }
 0xc85   :  { %1489 = vtanh.f32 %v961_v5 }
 0xc86   :  { %v966_v12 = vmul.f32 0.5, %v964_v7  ;;  %1159 = vmatpush.bf16.msrb.mxu1 %v1404_v3 }
 0xc88   :  { %v968_v9 = vmul.f32 %v966_v12, %v948_v57 }
 0xc8a   :  { %1160 = vmatpush.bf16.msrb.mxu1 %v1403_v4 }
 0xc8b   :  { %v1490_v8 = vpop.eup %1489 }
 0xc8c   :  { %v965_v13 = vadd.f32 1.0, %v1490_v8 }
 0xc8e   :  { %v967_v14 = vmul.f32 0.5, %v965_v13 }
 0xc90   :  { %v969_v11 = vmul.f32 %v967_v14, %v950_v63 }
 0xc92   :  { %v979_v15 = vpack.c.bf16 %v969_v11, %v968_v9  ;;  %v1432_v11 = vld [vmem:[%s1865_s2 + $0x17] ss:$0 sm:$0xff] }
 0xc94   :  { %1346 = vmatmul.msk.bf16.vlgmr.msra.gmra.mxu3 %vm519_vm4, %v979_v15 }
 0xd17   :  { %v1018_v16 = vpop.f32.mrf.mxu3 }
 0xd18   :  { %v1019_v17 = vadd.f32 %v1428_v38, %v1018_v16 }
 0xd1a   :  { %v1023_v18 = vadd.f32 %v1019_v17, %v913_v46 }
 0xd1c   :  { %v1027_v39 = vsel %vm48_vm0, %v1023_v18, 0.0 }
 0xd1d   :  { %1028 = vadd.xlane.f32.xlu2 %v1027_v39 }
 0xd1f   :  { %v1020_v19 = vpop.f32.mrf.mxu3 }
 0xd20   :  { %v1021_v20 = vadd.f32 %v1428_v38, %v1020_v19 }
 0xd22   :  { %v1024_v21 = vadd.f32 %v1021_v20, %v914_v47 }
 0xd24   :  { %v1030_v27 = vsel %vm48_vm0, %v1024_v21, 0.0 }
 0xd25   :  { %1031 = vadd.xlane.f32.xlu0 %v1030_v27 }
 0xd90   :  { %v1029_v22 = vpop.xlane.xlu2 %1028 }
 0xd91   :  { %v1033_v23 = vmul.f32 %v1029_v22, %v1550_v10 }
 0xd93   :  { %v1035_v24 = vsub.f32 %v1023_v18, %v1033_v23 }
 0xd95   :  { %v1037_v25 = vmul.f32 %v1035_v24, %v1035_v24 }
 0xd97   :  { %v1039_v26 = vsel %vm48_vm0, %v1037_v25, 0.0 }
 0xd98   :  { %v1032_v32 = vpop.xlane.xlu0 %1031  ;;  %1040 = vadd.xlane.f32.xlu1 %v1039_v26 }
 0xd99   :  { %v1034_v28 = vmul.f32 %v1032_v32, %v1550_v10 }
 0xd9b   :  { %v1036_v29 = vsub.f32 %v1024_v21, %v1034_v28 }
 0xd9d   :  { %v1038_v30 = vmul.f32 %v1036_v29, %v1036_v29 }
 0xd9f   :  { %v1042_v31 = vsel %vm48_vm0, %v1038_v30, 0.0 }
 0xda0   :  { %1043 = vadd.xlane.f32.xlu2 %v1042_v31 }
 0xe0b   :  { %v1041_v34 = vpop.xlane.xlu1 %1040 }
 0xe0c   :  { %v1045_v35 = vmul.f32 %v1041_v34, %v1550_v10 }
 0xe0e   :  { %v1047_v36 = vadd.f32 1e-12, %v1045_v35 }
 0xe10   :  { %1491 = vrsqrt.f32 %v1047_v36  ;;  %vm1055_vm3 = vweird.f32 %v1047_v36 }
 0xe13   :  { %v1044_v40 = vpop.xlane.xlu2 %1043 }
 0xe14   :  { %v1046_v41 = vmul.f32 %v1044_v40, %v1550_v10  ;;  %v1429_v10 = vld [vmem:[%s1865_s2 + $0x14] ss:$0 sm:$0xff] }
 0xe16   :  { %v1492_v53 = vpop.eup %1491  ;;  %v1048_v42 = vadd.f32 1e-12, %v1046_v41 }
 0xe17   :  { %v1050_v43 = vmul.f32 %v1492_v53, %v1047_v36  ;;  %vm1056_vm2 = vweird.f32 %v1492_v53 }
 0xe18   :  { %1493 = vrsqrt.f32 %v1048_v42  ;;  %vm1057_vm5 = vmor %vm1055_vm3, %vm1056_vm2  ;;  %vm1065_vm7 = vweird.f32 %v1048_v42 }
 0xe19   :  { %v1051_v44 = vmul.f32 %v1492_v53, %v1050_v43 }
 0xe1b   :  { %v1052_v54 = vmul.f32 0.5, %v1051_v44 }
 0xe1d   :  { %v1053_v45 = vsub.f32 1.5, %v1052_v54 }
 0xe1e   :  { %v1494_v46 = vpop.eup %1493 }
 0xe1f   :  { %v1054_v47 = vmul.f32 %v1492_v53, %v1053_v45  ;;  %v1060_v48 = vmul.f32 %v1494_v46, %v1048_v42  ;;  %vm1066_vm6 = vweird.f32 %v1494_v46 }
 0xe20   :  { %vm1067_vm8 = vmor %vm1065_vm7, %vm1066_vm6 }
 0xe21   :  { %v1061_v49 = vmul.f32 %v1494_v46, %v1060_v48  ;;  %v1058_v50 = vsel %vm1057_vm5, %v1492_v53, %v1054_v47 }
 0xe22   :  { %v1069_v55 = vmul.f32 %v1058_v50, %v1035_v24 }
 0xe23   :  { %v1062_v51 = vmul.f32 0.5, %v1061_v49 }
 0xe24   :  { %v1072_v59 = vmul.f32 %v1429_v10, %v1069_v55 }
 0xe25   :  { %v1063_v52 = vsub.f32 1.5, %v1062_v51 }
 0xe26   :  { %v1075_v62 = vadd.f32 %v1430_v58, %v1072_v59 }
 0xe27   :  { %v1064_v56 = vmul.f32 %v1494_v46, %v1063_v52 }
 0xe29   :  { %v1068_v57 = vsel %vm1067_vm8, %v1494_v46, %v1064_v56 }
 0xe2a   :  { %v1070_v60 = vmul.f32 %v1068_v57, %v1036_v29 }
 0xe2c   :  { %v1073_v61 = vmul.f32 %v1429_v10, %v1070_v60 }
 0xe2e   :  { %v1076_v63 = vadd.f32 %v1430_v58, %v1073_v61 }
 0xe30   :  { %v1081_v0 = vpack.c.bf16 %v1076_v63, %v1075_v62 }
 0xe32   :  { %1355 = vmatmul.msk.bf16.vlgmr.msrb.gmra.mxu0 %vm48_vm0, %v1081_v0 }
 0xeaf   :  { %v1108_v5 = vpop.f32.mrf.mxu0 }
 0xeb0   :  { %v1109_v7 = vadd.f32 %v1431_v6, %v1108_v5 }
 0xeb2   :  { %v1113_v13 = vmax.f32 %v1109_v7, 0.0 }
 0xeb7   :  { %v1110_v8 = vpop.f32.mrf.mxu0 }
 0xeb8   :  { %v1111_v12 = vadd.f32 %v1431_v6, %v1110_v8 }
 0xeba   :  { %v1114_v14 = vmax.f32 %v1111_v12, 0.0 }
 0xebc   :  { %v1123_v9 = vpack.c.bf16 %v1114_v14, %v1113_v13 }
 0xebe   :  { %1372 = vmatmul.msk.bf16.vlgmr.msrb.gmra.mxu1 %vm519_vm4, %v1123_v9 }
 0xf3b   :  { %v1162_v15 = vpop.f32.mrf.mxu1 }
 0xf3c   :  { %v1163_v38 = vadd.f32 %v1432_v11, %v1162_v15 }
 0xf3e   :  { %1167 = vst [vmem:[%s1872_s8] sm:$0xff] %v1163_v38 }
 0xf43   :  { %v1164_v16 = vpop.f32.mrf.mxu1 }
 0xf44   :  { %v1165_v17 = vadd.f32 %v1432_v11, %v1164_v16 }
 0xf46   :  { %1168 = vst [vmem:[%s1872_s8 + $0x8] sm:$0xff] %v1165_v17 }

</bundles_post_ra>
